<compile_context>
chip_gen: v6e
topology: v6e:2x2x1
jax: 0.10.0
libtpu: 0.0.40
codegen_flags: <defaults>
</compile_context>

<pallas_src>
import functools

import jax
import jax.numpy as jnp
from jax.experimental import pallas as pl
from jax.experimental.pallas import tpu as pltpu


# ----------------------------------------------------------------------------
# Patch-embed projection: Conv2d(in, hidden, k=ps, stride=ps) == patch matmul
# ----------------------------------------------------------------------------
def _linear_kernel(x_ref, w_ref, b_ref, o_ref):
    """bf16 x @ bf16 w (f32 accumulate) + f32 bias."""
    acc = jnp.dot(x_ref[...], w_ref[...], preferred_element_type=jnp.float32)
    o_ref[...] = (acc + b_ref[...]).astype(o_ref.dtype)


def _pick_tile(dim):
    # Cap at 512 so a large dim never silently becomes a full-array block.
    for t in (512, 256, 128):
        if dim % t == 0:
            return t
    assert dim <= 512, "pad the operand to a multiple of 128"
    return dim


def linear(x, w, b, *, out_dtype=jnp.float32):
    """x:(M,K) @ w:(K,N) + b:(N,).  Used for the patch-embed projection."""
    M, K = x.shape
    _, N = w.shape
    tm, tn = _pick_tile(M), _pick_tile(N)
    vmem_limit = int(min(64 << 20, max(
        32 << 20, 4 * (tm * K * 2 + K * tn * 2 + tm * tn * 4))))
    return pl.pallas_call(
        _linear_kernel,
        out_shape=jax.ShapeDtypeStruct((M, N), out_dtype),
        grid=(M // tm, N // tn),
        in_specs=[
            pl.BlockSpec((tm, K), lambda i, j: (i, 0)),
            pl.BlockSpec((K, tn), lambda i, j: (0, j)),
            pl.BlockSpec((1, tn), lambda i, j: (0, j)),
        ],
        out_specs=pl.BlockSpec((tm, tn), lambda i, j: (i, j)),
        compiler_params=pltpu.CompilerParams(
            dimension_semantics=("parallel", "parallel"),
            vmem_limit_bytes=vmem_limit),
    )(x, w, b.reshape(1, N))


# ----------------------------------------------------------------------------
# Whole transformer stack: one pallas_call, grid = (token_tiles, layers)
# ----------------------------------------------------------------------------
def _vit_stack_kernel(x_ref, ln1g_ref, ln1b_ref, wqkv_ref, bqkv_ref,
                      wo_ref, bo_ref, ln2g_ref, ln2b_ref,
                      w1_ref, b1_ref, w2_ref, b2_ref,
                      o_ref, attn_ref,
                      *, num_heads, head_dim, seq_len, eps):
    """Applies transformer layer `pl.program_id(1)` to the resident token tile.

    The residual stream is carried in the output block (same block index for
    every layer -> it stays in VMEM; HBM writeback happens once per tile).
    """
    layer = pl.program_id(1)
    D = num_heads * head_dim
    M = o_ref.shape[0]                 # tokens in this tile (= TB * seq_len)
    TB = M // seq_len                  # complete sequences in this tile

    # Layer 0: load the token tile into the resident residual-stream block.
    @pl.when(layer == 0)
    def _():
        o_ref[...] = x_ref[...]

    x = o_ref[...].astype(jnp.float32)                      # (M, D), f32

    def layer_norm(v, g, b):                                 # f32 math
        mu = jnp.mean(v, axis=-1, keepdims=True)
        var = jnp.mean(jnp.square(v - mu), axis=-1, keepdims=True)
        return (v - mu) * jax.lax.rsqrt(var + eps) * g + b

    # ---- attention block ----------------------------------------------------
    h = layer_norm(x, ln1g_ref[0].astype(jnp.float32),
                   ln1b_ref[0].astype(jnp.float32))
    # fused QKV: one (M, D) @ (D, 3D) matmul with M = tokens-in-tile
    qkv = jnp.dot(h.astype(jnp.bfloat16), wqkv_ref[0],
                  preferred_element_type=jnp.float32) + bqkv_ref[0]

    scale = 1.0 / float(head_dim) ** 0.5
    q = qkv[:, :D].reshape(TB, seq_len, D)
    k = qkv[:, D:2 * D].reshape(TB, seq_len, D)
    v = qkv[:, 2 * D:3 * D].reshape(TB, seq_len, D)
    for hd_i in range(num_heads):                 # heads = contiguous lane slices
        lo = hd_i * head_dim
        qh = q[:, :, lo:lo + head_dim].astype(jnp.bfloat16)
        kh = k[:, :, lo:lo + head_dim].astype(jnp.bfloat16)
        vh = v[:, :, lo:lo + head_dim].astype(jnp.bfloat16)
        s = jnp.einsum('bqd,bkd->bqk', qh, kh,
                       preferred_element_type=jnp.float32) * scale
        m = jnp.max(s, axis=-1, keepdims=True)
        p = jnp.exp(s - m)                                   # f32 softmax
        l = jnp.sum(p, axis=-1, keepdims=True)
        oh = jnp.einsum('bqk,bkd->bqd', p.astype(jnp.bfloat16), vh,
                        preferred_element_type=jnp.float32)
        oh = oh * pl.reciprocal(l, approx=True)
        # write this head straight into its lane slice (no concatenate)
        attn_ref[:, lo:lo + head_dim] = oh.reshape(M, head_dim)

    proj = jnp.dot(attn_ref[...].astype(jnp.bfloat16), wo_ref[0],
                   preferred_element_type=jnp.float32) + bo_ref[0]
    x = x + proj                                             # fused residual add

    # ---- MLP block -----------------------------------------------------------
    h2 = layer_norm(x, ln2g_ref[0].astype(jnp.float32),
                    ln2b_ref[0].astype(jnp.float32))
    m1 = jnp.dot(h2.astype(jnp.bfloat16), w1_ref[0],
                 preferred_element_type=jnp.float32) + b1_ref[0]
    m1 = jax.nn.gelu(m1, approximate=True)
    m2 = jnp.dot(m1.astype(jnp.bfloat16), w2_ref[0],
                 preferred_element_type=jnp.float32) + b2_ref[0]
    x = x + m2                                               # fused residual add

    o_ref[...] = x.astype(o_ref.dtype)


def transformer_stack(tokens, sp, *, num_heads, head_dim, seq_len, eps=1e-5):
    """tokens: (B*S, D) f32 -> (B*S, D) f32.  All layers in one pallas_call."""
    M, D = tokens.shape
    L = sp["w_qkv"].shape[0]
    mlp = sp["w1"].shape[2]
    num_seqs = M // seq_len

    # Token tile = a group of complete sequences (attention needs full S).
    # Target >=256 rows so the MXU gets a full M tile, capped by the batch.
    tb = max(1, min(num_seqs, -(-256 // seq_len)))
    while num_seqs % tb:
        tb -= 1
    tile_m = tb * seq_len
    n_tiles = num_seqs // tb

    def wspec(shape):
        # Layer-streamed block: index only by the layer grid axis.
        return pl.BlockSpec((1,) + shape,
                            lambda i, l, n=len(shape): (l,) + (0,) * n)

    tok_spec = pl.BlockSpec((tile_m, D), lambda i, l: (i, 0))

    kernel = functools.partial(_vit_stack_kernel, num_heads=num_heads,
                               head_dim=head_dim, seq_len=seq_len, eps=eps)

    # VMEM budget: bf16 layer weights x 2 buffers, f32 token blocks, f32
    # intermediates (qkv, MLP hidden, attention scratch) + margin.
    wbytes = 2 * 2 * (D * 3 * D + D * D + 2 * D * mlp)
    tbytes = 2 * 2 * 4 * tile_m * D
    ibytes = 4 * tile_m * (3 * D + mlp + 2 * D)
    vmem_limit = int(min(64 << 20, max(32 << 20, 2 * (wbytes + tbytes + ibytes))))

    return pl.pallas_call(
        kernel,
        out_shape=jax.ShapeDtypeStruct((M, D), tokens.dtype),
        grid=(n_tiles, L),                         # layer axis innermost
        in_specs=[
            tok_spec,                               # tokens (read at layer 0)
            wspec((1, D)), wspec((1, D)),           # ln1 gamma / beta
            wspec((D, 3 * D)), wspec((1, 3 * D)),   # fused QKV weight / bias
            wspec((D, D)), wspec((1, D)),           # out proj
            wspec((1, D)), wspec((1, D)),           # ln2 gamma / beta
            wspec((D, mlp)), wspec((1, mlp)),       # MLP w1 / b1
            wspec((mlp, D)), wspec((1, D)),         # MLP w2 / b2
        ],
        out_specs=tok_spec,                         # resident across layers
        scratch_shapes=[pltpu.VMEM((tile_m, D), jnp.float32)],   # attn heads
        compiler_params=pltpu.CompilerParams(
            dimension_semantics=("parallel", "arbitrary"),
            vmem_limit_bytes=vmem_limit),
    )(tokens,
      sp["ln1_g"], sp["ln1_b"], sp["w_qkv"], sp["b_qkv"],
      sp["wo"], sp["bo"], sp["ln2_g"], sp["ln2_b"],
      sp["w1"], sp["b1"], sp["w2"], sp["b2"])


# ----------------------------------------------------------------------------
# Model glue (thin XLA reshapes + parameter plumbing)
# ----------------------------------------------------------------------------
def vit_feature_extractor(x, params, *, patch_size, num_heads, head_dim):
    B, C, H, W = x.shape
    ps = patch_size
    Hp, Wp = H // ps, W // ps
    S = Hp * Wp
    # space-to-depth patch extraction (XLA); see TODO(synk) above.
    patches = (x.reshape(B, C, Hp, ps, Wp, ps)
                .transpose(0, 2, 4, 1, 3, 5)
                .reshape(B * S, C * ps * ps)
                .astype(jnp.bfloat16))
    tokens = linear(patches, params["conv_w"], params["conv_b"],
                    out_dtype=jnp.float32)                       # (B*S, D)
    tokens = transformer_stack(tokens, params["stack"], num_heads=num_heads,
                               head_dim=head_dim, seq_len=S)
    D = tokens.shape[-1]
    # .transpose(-1,-2).view_as(conv_out)  ->  (B, hidden, Hp, Wp)
    return tokens.reshape(B, S, D).transpose(0, 2, 1).reshape(B, D, Hp, Wp)


# ----------------------------------------------------------------------------
# Deterministic parameter construction (weights stored bf16, bias/LN f32)
# ----------------------------------------------------------------------------
def init_params(key, in_channels, patch_size, hidden_size, num_layers):
    def normal(k, shape, scale=0.02):
        return scale * jax.random.normal(k, shape, dtype=jnp.float32)

    kdim = in_channels * patch_size * patch_size
    mlp = 4 * hidden_size
    D, L = hidden_size, num_layers
    keys = jax.random.split(key, 1 + num_layers)
    # PyTorch conv weight (out, in, kh, kw) pre-reshaped to (in*kh*kw, out)
    params = {
        "conv_w": normal(keys[0], (D, kdim)).T.astype(jnp.bfloat16),
        "conv_b": jnp.zeros((D,), jnp.float32),
    }
    w_qkv, wo, w1, w2 = [], [], [], []
    for l in range(num_layers):
        ks = jax.random.split(keys[1 + l], 6)
        wq, wk, wv = (normal(ks[i], (D, D)) for i in range(3))
        w_qkv.append(jnp.concatenate([wq, wk, wv], axis=1))
        wo.append(normal(ks[3], (D, D)))
        w1.append(normal(ks[4], (D, mlp)))
        w2.append(normal(ks[5], (mlp, D)))
    params["stack"] = {
        "ln1_g": jnp.ones((L, 1, D), jnp.float32),
        "ln1_b": jnp.zeros((L, 1, D), jnp.float32),
        "w_qkv": jnp.stack(w_qkv).astype(jnp.bfloat16),     # (L, D, 3D)
        "b_qkv": jnp.zeros((L, 1, 3 * D), jnp.float32),
        "wo": jnp.stack(wo).astype(jnp.bfloat16),           # (L, D, D)
        "bo": jnp.zeros((L, 1, D), jnp.float32),
        "ln2_g": jnp.ones((L, 1, D), jnp.float32),
        "ln2_b": jnp.zeros((L, 1, D), jnp.float32),
        "w1": jnp.stack(w1).astype(jnp.bfloat16),           # (L, D, 4D)
        "b1": jnp.zeros((L, 1, mlp), jnp.float32),
        "w2": jnp.stack(w2).astype(jnp.bfloat16),           # (L, 4D, D)
        "b2": jnp.zeros((L, 1, D), jnp.float32),
    }
    return params


if __name__ == "__main__":
    # Module config: num_heads = hidden_size // 128, head_dim = 128 (per spec).
    in_channels, patch_size, hidden_size, num_layers = 4, 4, 128, 2
    num_heads, head_dim = hidden_size // 128, 128
    B, H, W = 2, 16, 16

    key = jax.random.PRNGKey(0)
    k_param, k_in = jax.random.split(key)
    params = init_params(k_param, in_channels, patch_size, hidden_size, num_layers)
    x = jax.random.normal(k_in, (B, in_channels, H, W), dtype=jnp.float32)

    fn = jax.jit(functools.partial(
        vit_feature_extractor, patch_size=patch_size,
        num_heads=num_heads, head_dim=head_dim))
    out = fn(x, params)
    jax.block_until_ready(out)

    expected = (B, hidden_size, H // patch_size, W // patch_size)
    assert out.shape == expected, (out.shape, expected)
    assert out.dtype == jnp.float32
    print("KERNEL_OK")
</pallas_src>

<mosaic_0001>
module attributes {stable_mosaic.version = 11 : i64} {
  func.func @_linear_kernel(%arg0: i32, %arg1: i32, %arg2: memref<32x64xbf16, #tpu.memory_space<vmem>>, %arg3: memref<64x128xbf16, #tpu.memory_space<vmem>>, %arg4: memref<1x128xf32, #tpu.memory_space<vmem>>, %arg5: memref<32x128xf32, #tpu.memory_space<vmem>>) attributes {dimension_semantics = [#tpu.dimension_semantics<parallel>, #tpu.dimension_semantics<parallel>], iteration_bounds = array<i64: 1, 1>, scalar_prefetch = 0 : i64, scratch_operands = 0 : i64, tpu.core_type = #tpu.core_type<tc>, window_params = [{transform_indices = @transform_0, window_bounds = array<i64: 32, 64>}, {transform_indices = @transform_1, window_bounds = array<i64: 64, 128>}, {transform_indices = @transform_2, window_bounds = array<i64: 1, 128>}, {transform_indices = @transform_3, window_bounds = array<i64: 32, 128>}]} {
    %c0 = arith.constant 0 : index
    %c0_0 = arith.constant 0 : index
    %0 = vector.load %arg2[%c0, %c0_0] : memref<32x64xbf16, #tpu.memory_space<vmem>>, vector<32x64xbf16>
    %c0_1 = arith.constant 0 : index
    %c0_2 = arith.constant 0 : index
    %1 = vector.load %arg3[%c0_1, %c0_2] : memref<64x128xbf16, #tpu.memory_space<vmem>>, vector<64x128xbf16>
    %cst = arith.constant dense<0.000000e+00> : vector<32x128xf32>
    %2 = tpu.matmul %0, %1, %cst {dimension_numbers = #tpu.dot_dimension_numbers<[1], [0], [0], [1], [0, 0, 1, 1], [], []>} : vector<32x64xbf16>, vector<64x128xbf16>, vector<32x128xf32> -> vector<32x128xf32>
    %c0_3 = arith.constant 0 : index
    %c0_4 = arith.constant 0 : index
    %3 = vector.load %arg4[%c0_3, %c0_4] : memref<1x128xf32, #tpu.memory_space<vmem>>, vector<1x128xf32>
    %4 = vector.broadcast %3 : vector<1x128xf32> to vector<32x128xf32>
    %5 = arith.addf %2, %4 : vector<32x128xf32>
    %c0_5 = arith.constant 0 : index
    %c0_6 = arith.constant 0 : index
    %6 = vector.load %arg5[%c0_5, %c0_6] : memref<32x128xf32, #tpu.memory_space<vmem>>, vector<32x128xf32>
    tpu.vector_store %arg5[%c0_5, %c0_6], %5 {strides = array<i32>} : memref<32x128xf32, #tpu.memory_space<vmem>>, vector<32x128xf32>,
    return
  }
  func.func @transform_0(%arg0: i32, %arg1: i32) -> (i32, i32) {
    %c0_i32 = arith.constant 0 : i32
    %c0_i32_0 = arith.constant 0 : i32
    return %arg0, %c0_i32 : i32, i32
  }
  func.func @transform_1(%arg0: i32, %arg1: i32) -> (i32, i32) {
    %c0_i32 = arith.constant 0 : i32
    %c0_i32_0 = arith.constant 0 : i32
    return %c0_i32, %arg1 : i32, i32
  }
  func.func @transform_2(%arg0: i32, %arg1: i32) -> (i32, i32) {
    %c0_i32 = arith.constant 0 : i32
    %c0_i32_0 = arith.constant 0 : i32
    return %c0_i32, %arg1 : i32, i32
  }
  func.func @transform_3(%arg0: i32, %arg1: i32) -> (i32, i32) {
    %c0_i32 = arith.constant 0 : i32
    return %arg0, %arg1 : i32, i32
  }
}

module attributes {stable_mosaic.version = 11 : i64} {
  func.func @_vit_stack_kernel(%arg0: i32, %arg1: i32, %arg2: memref<32x128xf32, #tpu.memory_space<vmem>>, %arg3: memref<1x1x128xf32, #tpu.memory_space<vmem>>, %arg4: memref<1x1x128xf32, #tpu.memory_space<vmem>>, %arg5: memref<1x128x384xbf16, #tpu.memory_space<vmem>>, %arg6: memref<1x1x384xf32, #tpu.memory_space<vmem>>, %arg7: memref<1x128x128xbf16, #tpu.memory_space<vmem>>, %arg8: memref<1x1x128xf32, #tpu.memory_space<vmem>>, %arg9: memref<1x1x128xf32, #tpu.memory_space<vmem>>, %arg10: memref<1x1x128xf32, #tpu.memory_space<vmem>>, %arg11: memref<1x128x512xbf16, #tpu.memory_space<vmem>>, %arg12: memref<1x1x512xf32, #tpu.memory_space<vmem>>, %arg13: memref<1x512x128xbf16, #tpu.memory_space<vmem>>, %arg14: memref<1x1x128xf32, #tpu.memory_space<vmem>>, %arg15: memref<32x128xf32, #tpu.memory_space<vmem>>, %arg16: memref<32x128xf32, #tpu.memory_space<vmem>>) attributes {dimension_semantics = [#tpu.dimension_semantics<parallel>, #tpu.dimension_semantics<arbitrary>], iteration_bounds = array<i64: 1, 2>, scalar_prefetch = 0 : i64, scratch_operands = 1 : i64, tpu.core_type = #tpu.core_type<tc>, window_params = [{transform_indices = @transform_0, window_bounds = array<i64: 32, 128>}, {transform_indices = @transform_1, window_bounds = array<i64: 1, 1, 128>}, {transform_indices = @transform_2, window_bounds = array<i64: 1, 1, 128>}, {transform_indices = @transform_3, window_bounds = array<i64: 1, 128, 384>}, {transform_indices = @transform_4, window_bounds = array<i64: 1, 1, 384>}, {transform_indices = @transform_5, window_bounds = array<i64: 1, 128, 128>}, {transform_indices = @transform_6, window_bounds = array<i64: 1, 1, 128>}, {transform_indices = @transform_7, window_bounds = array<i64: 1, 1, 128>}, {transform_indices = @transform_8, window_bounds = array<i64: 1, 1, 128>}, {transform_indices = @transform_9, window_bounds = array<i64: 1, 128, 512>}, {transform_indices = @transform_10, window_bounds = array<i64: 1, 1, 512>}, {transform_indices = @transform_11, window_bounds = array<i64: 1, 512, 128>}, {transform_indices = @transform_12, window_bounds = array<i64: 1, 1, 128>}, {transform_indices = @transform_13, window_bounds = array<i64: 32, 128>}]} {
    %c0_i32 = arith.constant 0 : i32
    %0 = arith.cmpi eq, %arg1, %c0_i32 : i32
    %1 = arith.extui %0 : i1 to i32
    %c0_i32_0 = arith.constant 0 : i32
    %2 = arith.cmpi ne, %1, %c0_i32_0 : i32
    scf.if %2 {
      %c0_66 = arith.constant 0 : index
      %c0_67 = arith.constant 0 : index
      %131 = vector.load %arg2[%c0_66, %c0_67] : memref<32x128xf32, #tpu.memory_space<vmem>>, vector<32x128xf32>
      %c0_68 = arith.constant 0 : index
      %c0_69 = arith.constant 0 : index
      %132 = vector.load %arg15[%c0_68, %c0_69] : memref<32x128xf32, #tpu.memory_space<vmem>>, vector<32x128xf32>
      tpu.vector_store %arg15[%c0_68, %c0_69], %131 {strides = array<i32>} : memref<32x128xf32, #tpu.memory_space<vmem>>, vector<32x128xf32>,
    } else {
    }
    %c0 = arith.constant 0 : index
    %c0_1 = arith.constant 0 : index
    %3 = vector.load %arg15[%c0, %c0_1] : memref<32x128xf32, #tpu.memory_space<vmem>>, vector<32x128xf32>
    %c0_2 = arith.constant 0 : index
    %c0_3 = arith.constant 0 : index
    %c0_4 = arith.constant 0 : index
    %4 = vector.load %arg3[%c0_2, %c0_3, %c0_4] : memref<1x1x128xf32, #tpu.memory_space<vmem>>, vector<1x1x128xf32>
    %5 = vector.shape_cast %4 : vector<1x1x128xf32> to vector<1x128xf32>
    %c0_5 = arith.constant 0 : index
    %c0_6 = arith.constant 0 : index
    %c0_7 = arith.constant 0 : index
    %6 = vector.load %arg4[%c0_5, %c0_6, %c0_7] : memref<1x1x128xf32, #tpu.memory_space<vmem>>, vector<1x1x128xf32>
    %7 = vector.shape_cast %6 : vector<1x1x128xf32> to vector<1x128xf32>
    %cst = arith.constant dense<0.000000e+00> : vector<32xf32>
    %8 = vector.multi_reduction <add>, %3, %cst [1] : vector<32x128xf32> to vector<32xf32>
    %9 = vector.shape_cast %8 : vector<32xf32> to vector<32x1xf32>
    %cst_8 = arith.constant 1.280000e+02 : f32
    %10 = vector.broadcast %cst_8 : f32 to vector<32x1xf32>
    %11 = arith.divf %9, %10 : vector<32x1xf32>
    %12 = vector.broadcast %11 : vector<32x1xf32> to vector<32x128xf32>
    %13 = arith.subf %3, %12 : vector<32x128xf32>
    %14 = arith.mulf %13, %13 : vector<32x128xf32>
    %cst_9 = arith.constant dense<0.000000e+00> : vector<32xf32>
    %15 = vector.multi_reduction <add>, %14, %cst_9 [1] : vector<32x128xf32> to vector<32xf32>
    %16 = vector.shape_cast %15 : vector<32xf32> to vector<32x1xf32>
    %cst_10 = arith.constant 1.280000e+02 : f32
    %17 = vector.broadcast %cst_10 : f32 to vector<32x1xf32>
    %18 = arith.divf %16, %17 : vector<32x1xf32>
    %19 = vector.broadcast %11 : vector<32x1xf32> to vector<32x128xf32>
    %20 = arith.subf %3, %19 : vector<32x128xf32>
    %cst_11 = arith.constant 9.99999974E-6 : f32
    %21 = vector.broadcast %cst_11 : f32 to vector<32x1xf32>
    %22 = arith.addf %18, %21 : vector<32x1xf32>
    %23 = math.rsqrt %22 : vector<32x1xf32>
    %24 = vector.broadcast %23 : vector<32x1xf32> to vector<32x128xf32>
    %25 = arith.mulf %20, %24 : vector<32x128xf32>
    %26 = vector.broadcast %5 : vector<1x128xf32> to vector<32x128xf32>
    %27 = arith.mulf %25, %26 : vector<32x128xf32>
    %28 = vector.broadcast %7 : vector<1x128xf32> to vector<32x128xf32>
    %29 = arith.addf %27, %28 : vector<32x128xf32>
    %30 = arith.truncf %29 : vector<32x128xf32> to vector<32x128xbf16>
    %c0_12 = arith.constant 0 : index
    %c0_13 = arith.constant 0 : index
    %c0_14 = arith.constant 0 : index
    %31 = vector.load %arg5[%c0_12, %c0_13, %c0_14] : memref<1x128x384xbf16, #tpu.memory_space<vmem>>, vector<1x128x384xbf16>
    %32 = vector.shape_cast %31 : vector<1x128x384xbf16> to vector<128x384xbf16>
    %cst_15 = arith.constant dense<0.000000e+00> : vector<32x384xf32>
    %33 = tpu.matmul %30, %32, %cst_15 {dimension_numbers = #tpu.dot_dimension_numbers<[1], [0], [0], [1], [0, 0, 1, 1], [], []>} : vector<32x128xbf16>, vector<128x384xbf16>, vector<32x384xf32> -> vector<32x384xf32>
    %c0_16 = arith.constant 0 : index
    %c0_17 = arith.constant 0 : index
    %c0_18 = arith.constant 0 : index
    %34 = vector.load %arg6[%c0_16, %c0_17, %c0_18] : memref<1x1x384xf32, #tpu.memory_space<vmem>>, vector<1x1x384xf32>
    %35 = vector.shape_cast %34 : vector<1x1x384xf32> to vector<1x384xf32>
    %36 = vector.broadcast %35 : vector<1x384xf32> to vector<32x384xf32>
    %37 = arith.addf %33, %36 : vector<32x384xf32>
    %38 = vector.extract_strided_slice %37 {offsets = [0, 0], sizes = [32, 128], strides = [1, 1]} : vector<32x384xf32> to vector<32x128xf32>
    %39 = vector.shape_cast %38 : vector<32x128xf32> to vector<2x16x128xf32>
    %40 = vector.extract_strided_slice %37 {offsets = [0, 128], sizes = [32, 128], strides = [1, 1]} : vector<32x384xf32> to vector<32x128xf32>
    %41 = vector.shape_cast %40 : vector<32x128xf32> to vector<2x16x128xf32>
    %42 = vector.extract_strided_slice %37 {offsets = [0, 256], sizes = [32, 128], strides = [1, 1]} : vector<32x384xf32> to vector<32x128xf32>
    %43 = vector.shape_cast %42 : vector<32x128xf32> to vector<2x16x128xf32>
    %44 = arith.truncf %39 : vector<2x16x128xf32> to vector<2x16x128xbf16>
    %45 = arith.truncf %41 : vector<2x16x128xf32> to vector<2x16x128xbf16>
    %46 = arith.truncf %43 : vector<2x16x128xf32> to vector<2x16x128xbf16>
    "tpu.trace_start"() <{level = 10 : i32, message = "bqd,bkd->bqk"}> : () -> ()
    %cst_19 = arith.constant dense<0.000000e+00> : vector<2x16x16xf32>
    %47 = tpu.matmul %44, %45, %cst_19 {dimension_numbers = #tpu.dot_dimension_numbers<[2], [2], [1], [1], [0, 0, 0, 1, 1, 1], [0], [0]>} : vector<2x16x128xbf16>, vector<2x16x128xbf16>, vector<2x16x16xf32> -> vector<2x16x16xf32>
    "tpu.trace_stop"() : () -> ()
    %cst_20 = arith.constant 0.0883883461 : f32
    %48 = vector.broadcast %cst_20 : f32 to vector<2x16x16xf32>
    %49 = arith.mulf %47, %48 : vector<2x16x16xf32>
    %cst_21 = arith.constant dense<0xFF800000> : vector<2x16xf32>
    %50 = vector.multi_reduction <maximumf>, %49, %cst_21 [2] : vector<2x16x16xf32> to vector<2x16xf32>
    %51 = vector.shape_cast %50 : vector<2x16xf32> to vector<2x16x1xf32>
    %52 = vector.broadcast %51 : vector<2x16x1xf32> to vector<2x16x16xf32>
    %53 = arith.subf %49, %52 : vector<2x16x16xf32>
    %54 = math.exp %53 : vector<2x16x16xf32>
    %cst_22 = arith.constant dense<0.000000e+00> : vector<2x16xf32>
    %55 = vector.multi_reduction <add>, %54, %cst_22 [2] : vector<2x16x16xf32> to vector<2x16xf32>
    %56 = vector.shape_cast %55 : vector<2x16xf32> to vector<2x16x1xf32>
    %57 = arith.truncf %54 : vector<2x16x16xf32> to vector<2x16x16xbf16>
    "tpu.trace_start"() <{level = 10 : i32, message = "bqk,bkd->bqd"}> : () -> ()
    %cst_23 = arith.constant dense<0.000000e+00> : vector<2x16x128xf32>
    %58 = tpu.matmul %57, %46, %cst_23 {dimension_numbers = #tpu.dot_dimension_numbers<[2], [1], [1], [2], [0, 0, 0, 1, 1, 2], [0], [0]>} : vector<2x16x16xbf16>, vector<2x16x128xbf16>, vector<2x16x128xf32> -> vector<2x16x128xf32>
    "tpu.trace_stop"() : () -> ()
    %59 = tpu.reciprocal %56 {approx = true} : vector<2x16x1xf32> -> vector<2x16x1xf32>
    %60 = vector.broadcast %59 : vector<2x16x1xf32> to vector<2x16x128xf32>
    %61 = arith.mulf %58, %60 : vector<2x16x128xf32>
    %62 = vector.shape_cast %61 : vector<2x16x128xf32> to vector<32x128xf32>
    %c0_24 = arith.constant 0 : index
    %c0_25 = arith.constant 0 : index
    %63 = vector.load %arg16[%c0_24, %c0_25] : memref<32x128xf32, #tpu.memory_space<vmem>>, vector<32x128xf32>
    tpu.vector_store %arg16[%c0_24, %c0_25], %62 {strides = array<i32>} : memref<32x128xf32, #tpu.memory_space<vmem>>, vector<32x128xf32>,
    %c0_26 = arith.constant 0 : index
    %c0_27 = arith.constant 0 : index
    %64 = vector.load %arg16[%c0_26, %c0_27] : memref<32x128xf32, #tpu.memory_space<vmem>>, vector<32x128xf32>
    %65 = arith.truncf %64 : vector<32x128xf32> to vector<32x128xbf16>
    %c0_28 = arith.constant 0 : index
    %c0_29 = arith.constant 0 : index
    %c0_30 = arith.constant 0 : index
    %66 = vector.load %arg7[%c0_28, %c0_29, %c0_30] : memref<1x128x128xbf16, #tpu.memory_space<vmem>>, vector<1x128x128xbf16>
    %67 = vector.shape_cast %66 : vector<1x128x128xbf16> to vector<128x128xbf16>
    %cst_31 = arith.constant dense<0.000000e+00> : vector<32x128xf32>
    %68 = tpu.matmul %65, %67, %cst_31 {dimension_numbers = #tpu.dot_dimension_numbers<[1], [0], [0], [1], [0, 0, 1, 1], [], []>} : vector<32x128xbf16>, vector<128x128xbf16>, vector<32x128xf32> -> vector<32x128xf32>
    %c0_32 = arith.constant 0 : index
    %c0_33 = arith.constant 0 : index
    %c0_34 = arith.constant 0 : index
    %69 = vector.load %arg8[%c0_32, %c0_33, %c0_34] : memref<1x1x128xf32, #tpu.memory_space<vmem>>, vector<1x1x128xf32>
    %70 = vector.shape_cast %69 : vector<1x1x128xf32> to vector<1x128xf32>
    %71 = vector.broadcast %70 : vector<1x128xf32> to vector<32x128xf32>
    %72 = arith.addf %68, %71 : vector<32x128xf32>
    %73 = arith.addf %3, %72 : vector<32x128xf32>
    %c0_35 = arith.constant 0 : index
    %c0_36 = arith.constant 0 : index
    %c0_37 = arith.constant 0 : index
    %74 = vector.load %arg9[%c0_35, %c0_36, %c0_37] : memref<1x1x128xf32, #tpu.memory_space<vmem>>, vector<1x1x128xf32>
    %75 = vector.shape_cast %74 : vector<1x1x128xf32> to vector<1x128xf32>
    %c0_38 = arith.constant 0 : index
    %c0_39 = arith.constant 0 : index
    %c0_40 = arith.constant 0 : index
    %76 = vector.load %arg10[%c0_38, %c0_39, %c0_40] : memref<1x1x128xf32, #tpu.memory_space<vmem>>, vector<1x1x128xf32>
    %77 = vector.shape_cast %76 : vector<1x1x128xf32> to vector<1x128xf32>
    %cst_41 = arith.constant dense<0.000000e+00> : vector<32xf32>
    %78 = vector.multi_reduction <add>, %73, %cst_41 [1] : vector<32x128xf32> to vector<32xf32>
    %79 = vector.shape_cast %78 : vector<32xf32> to vector<32x1xf32>
    %cst_42 = arith.constant 1.280000e+02 : f32
    %80 = vector.broadcast %cst_42 : f32 to vector<32x1xf32>
    %81 = arith.divf %79, %80 : vector<32x1xf32>
    %82 = vector.broadcast %81 : vector<32x1xf32> to vector<32x128xf32>
    %83 = arith.subf %73, %82 : vector<32x128xf32>
    %84 = arith.mulf %83, %83 : vector<32x128xf32>
    %cst_43 = arith.constant dense<0.000000e+00> : vector<32xf32>
    %85 = vector.multi_reduction <add>, %84, %cst_43 [1] : vector<32x128xf32> to vector<32xf32>
    %86 = vector.shape_cast %85 : vector<32xf32> to vector<32x1xf32>
    %cst_44 = arith.constant 1.280000e+02 : f32
    %87 = vector.broadcast %cst_44 : f32 to vector<32x1xf32>
    %88 = arith.divf %86, %87 : vector<32x1xf32>
    %89 = vector.broadcast %81 : vector<32x1xf32> to vector<32x128xf32>
    %90 = arith.subf %73, %89 : vector<32x128xf32>
    %cst_45 = arith.constant 9.99999974E-6 : f32
    %91 = vector.broadcast %cst_45 : f32 to vector<32x1xf32>
    %92 = arith.addf %88, %91 : vector<32x1xf32>
    %93 = math.rsqrt %92 : vector<32x1xf32>
    %94 = vector.broadcast %93 : vector<32x1xf32> to vector<32x128xf32>
    %95 = arith.mulf %90, %94 : vector<32x128xf32>
    %96 = vector.broadcast %75 : vector<1x128xf32> to vector<32x128xf32>
    %97 = arith.mulf %95, %96 : vector<32x128xf32>
    %98 = vector.broadcast %77 : vector<1x128xf32> to vector<32x128xf32>
    %99 = arith.addf %97, %98 : vector<32x128xf32>
    %100 = arith.truncf %99 : vector<32x128xf32> to vector<32x128xbf16>
    %c0_46 = arith.constant 0 : index
    %c0_47 = arith.constant 0 : index
    %c0_48 = arith.constant 0 : index
    %101 = vector.load %arg11[%c0_46, %c0_47, %c0_48] : memref<1x128x512xbf16, #tpu.memory_space<vmem>>, vector<1x128x512xbf16>
    %102 = vector.shape_cast %101 : vector<1x128x512xbf16> to vector<128x512xbf16>
    %cst_49 = arith.constant dense<0.000000e+00> : vector<32x512xf32>
    %103 = tpu.matmul %100, %102, %cst_49 {dimension_numbers = #tpu.dot_dimension_numbers<[1], [0], [0], [1], [0, 0, 1, 1], [], []>} : vector<32x128xbf16>, vector<128x512xbf16>, vector<32x512xf32> -> vector<32x512xf32>
    %c0_50 = arith.constant 0 : index
    %c0_51 = arith.constant 0 : index
    %c0_52 = arith.constant 0 : index
    %104 = vector.load %arg12[%c0_50, %c0_51, %c0_52] : memref<1x1x512xf32, #tpu.memory_space<vmem>>, vector<1x1x512xf32>
    %105 = vector.shape_cast %104 : vector<1x1x512xf32> to vector<1x512xf32>
    %106 = vector.broadcast %105 : vector<1x512xf32> to vector<32x512xf32>
    %107 = arith.addf %103, %106 : vector<32x512xf32>
    %108 = arith.mulf %107, %107 : vector<32x512xf32>
    %109 = arith.mulf %107, %108 : vector<32x512xf32>
    %cst_53 = arith.constant 4.471500e-02 : f32
    %110 = vector.broadcast %cst_53 : f32 to vector<32x512xf32>
    %111 = arith.mulf %110, %109 : vector<32x512xf32>
    %112 = arith.addf %107, %111 : vector<32x512xf32>
    %cst_54 = arith.constant 0.797884583 : f32
    %113 = vector.broadcast %cst_54 : f32 to vector<32x512xf32>
    %114 = arith.mulf %113, %112 : vector<32x512xf32>
    %115 = math.tanh %114 : vector<32x512xf32>
    %cst_55 = arith.constant 1.000000e+00 : f32
    %116 = vector.broadcast %cst_55 : f32 to vector<32x512xf32>
    %117 = arith.addf %116, %115 : vector<32x512xf32>
    %cst_56 = arith.constant 5.000000e-01 : f32
    %118 = vector.broadcast %cst_56 : f32 to vector<32x512xf32>
    %119 = arith.mulf %118, %117 : vector<32x512xf32>
    %120 = arith.mulf %107, %119 : vector<32x512xf32>
    %121 = arith.truncf %120 : vector<32x512xf32> to vector<32x512xbf16>
    %c0_57 = arith.constant 0 : index
    %c0_58 = arith.constant 0 : index
    %c0_59 = arith.constant 0 : index
    %122 = vector.load %arg13[%c0_57, %c0_58, %c0_59] : memref<1x512x128xbf16, #tpu.memory_space<vmem>>, vector<1x512x128xbf16>
    %123 = vector.shape_cast %122 : vector<1x512x128xbf16> to vector<512x128xbf16>
    %cst_60 = arith.constant dense<0.000000e+00> : vector<32x128xf32>
    %124 = tpu.matmul %121, %123, %cst_60 {dimension_numbers = #tpu.dot_dimension_numbers<[1], [0], [0], [1], [0, 0, 1, 1], [], []>} : vector<32x512xbf16>, vector<512x128xbf16>, vector<32x128xf32> -> vector<32x128xf32>
    %c0_61 = arith.constant 0 : index
    %c0_62 = arith.constant 0 : index
    %c0_63 = arith.constant 0 : index
    %125 = vector.load %arg14[%c0_61, %c0_62, %c0_63] : memref<1x1x128xf32, #tpu.memory_space<vmem>>, vector<1x1x128xf32>
    %126 = vector.shape_cast %125 : vector<1x1x128xf32> to vector<1x128xf32>
    %127 = vector.broadcast %126 : vector<1x128xf32> to vector<32x128xf32>
    %128 = arith.addf %124, %127 : vector<32x128xf32>
    %129 = arith.addf %73, %128 : vector<32x128xf32>
    %c0_64 = arith.constant 0 : index
    %c0_65 = arith.constant 0 : index
    %130 = vector.load %arg15[%c0_64, %c0_65] : memref<32x128xf32, #tpu.memory_space<vmem>>, vector<32x128xf32>
    tpu.vector_store %arg15[%c0_64, %c0_65], %129 {strides = array<i32>} : memref<32x128xf32, #tpu.memory_space<vmem>>, vector<32x128xf32>,
    return
  }
  func.func @transform_0(%arg0: i32, %arg1: i32) -> (i32, i32) {
    %c0_i32 = arith.constant 0 : i32
    %c0_i32_0 = arith.constant 0 : i32
    return %arg0, %c0_i32 : i32, i32
  }
  func.func @transform_1(%arg0: i32, %arg1: i32) -> (i32, i32, i32) {
    %c0_i32 = arith.constant 0 : i32
    %c0_i32_0 = arith.constant 0 : i32
    %c0_i32_1 = arith.constant 0 : i32
    return %arg1, %c0_i32, %c0_i32_0 : i32, i32, i32
  }
  func.func @transform_2(%arg0: i32, %arg1: i32) -> (i32, i32, i32) {
    %c0_i32 = arith.constant 0 : i32
    %c0_i32_0 = arith.constant 0 : i32
    %c0_i32_1 = arith.constant 0 : i32
    return %arg1, %c0_i32, %c0_i32_0 : i32, i32, i32
  }
  func.func @transform_3(%arg0: i32, %arg1: i32) -> (i32, i32, i32) {
    %c0_i32 = arith.constant 0 : i32
    %c0_i32_0 = arith.constant 0 : i32
    %c0_i32_1 = arith.constant 0 : i32
    return %arg1, %c0_i32, %c0_i32_0 : i32, i32, i32
  }
  func.func @transform_4(%arg0: i32, %arg1: i32) -> (i32, i32, i32) {
    %c0_i32 = arith.constant 0 : i32
    %c0_i32_0 = arith.constant 0 : i32
    %c0_i32_1 = arith.constant 0 : i32
    return %arg1, %c0_i32, %c0_i32_0 : i32, i32, i32
  }
  func.func @transform_5(%arg0: i32, %arg1: i32) -> (i32, i32, i32) {
    %c0_i32 = arith.constant 0 : i32
    %c0_i32_0 = arith.constant 0 : i32
    %c0_i32_1 = arith.constant 0 : i32
    return %arg1, %c0_i32, %c0_i32_0 : i32, i32, i32
  }
  func.func @transform_6(%arg0: i32, %arg1: i32) -> (i32, i32, i32) {
    %c0_i32 = arith.constant 0 : i32
    %c0_i32_0 = arith.constant 0 : i32
    %c0_i32_1 = arith.constant 0 : i32
    return %arg1, %c0_i32, %c0_i32_0 : i32, i32, i32
  }
  func.func @transform_7(%arg0: i32, %arg1: i32) -> (i32, i32, i32) {
    %c0_i32 = arith.constant 0 : i32
    %c0_i32_0 = arith.constant 0 : i32
    %c0_i32_1 = arith.constant 0 : i32
    return %arg1, %c0_i32, %c0_i32_0 : i32, i32, i32
  }
  func.func @transform_8(%arg0: i32, %arg1: i32) -> (i32, i32, i32) {
    %c0_i32 = arith.constant 0 : i32
    %c0_i32_0 = arith.constant 0 : i32
    %c0_i32_1 = arith.constant 0 : i32
    return %arg1, %c0_i32, %c0_i32_0 : i32, i32, i32
  }
  func.func @transform_9(%arg0: i32, %arg1: i32) -> (i32, i32, i32) {
    %c0_i32 = arith.constant 0 : i32
    %c0_i32_0 = arith.constant 0 : i32
    %c0_i32_1 = arith.constant 0 : i32
    return %arg1, %c0_i32, %c0_i32_0 : i32, i32, i32
  }
  func.func @transform_10(%arg0: i32, %arg1: i32) -> (i32, i32, i32) {
    %c0_i32 = arith.constant 0 : i32
    %c0_i32_0 = arith.constant 0 : i32
    %c0_i32_1 = arith.constant 0 : i32
    return %arg1, %c0_i32, %c0_i32_0 : i32, i32, i32
  }
  func.func @transform_11(%arg0: i32, %arg1: i32) -> (i32, i32, i32) {
    %c0_i32 = arith.constant 0 : i32
    %c0_i32_0 = arith.constant 0 : i32
    %c0_i32_1 = arith.constant 0 : i32
    return %arg1, %c0_i32, %c0_i32_0 : i32, i32, i32
  }
  func.func @transform_12(%arg0: i32, %arg1: i32) -> (i32, i32, i32) {
    %c0_i32 = arith.constant 0 : i32
    %c0_i32_0 = arith.constant 0 : i32
    %c0_i32_1 = arith.constant 0 : i32
    return %arg1, %c0_i32, %c0_i32_0 : i32, i32, i32
  }
  func.func @transform_13(%arg0: i32, %arg1: i32) -> (i32, i32) {
    %c0_i32 = arith.constant 0 : i32
    %c0_i32_0 = arith.constant 0 : i32
    return %arg0, %c0_i32 : i32, i32
  }
}

</mosaic_0001>

<bundles_post_ra>
// kernel: vit_feature_extractor.2
= control target key start
LH: loop header
LB: loop body
LE: loop exit
PB: predicated region body
PF: predicated region fallthrough
CT: control target
= control target key end

     0   :  { %vm68_vm0 = vcmask 523264   ;;  %s218_s1 = inlined_call_operand.vmem [shape: bf16[64,128], index: 1, kind: input, shape index: {}]   ;;  %s219_s0 = inlined_call_operand.vmem [shape: bf16[32,64], index: 0, kind: input, shape index: {}]   ;;  %s220_s2 = inlined_call_operand.vmem [shape: f32[1,128], index: 2, kind: input, shape index: {}]   ;;  %s221_s3 = inlined_call_operand.vmem [shape: f32[32,128], index: 3, kind: output, shape index: {}]  }
   0x1   :  { %v159_v0 = vld [vmem:[%s218_s1 + $0x18] sm:$0xff]   ;;  %v160_v1 = vld [vmem:[%s218_s1 + $0x10] sm:$0xff]   ;;  %v161_v2 = vld [vmem:[%s218_s1 + $0x8] sm:$0xff]  }
   0x2   :  { %147 = vmatprep.subr.bf16.mxu0 %v159_v0  ;;  %v163_v3 = vld [vmem:[%s219_s0] sm:$0xff]   ;;  %v164_v5 = vld [vmem:[%s219_s0 + $0x8] sm:$0xff]  }
   0x3   :  { %148 = vmatpush3.bf16.msra.mxu0 %v159_v0  ;;  %155 = vmatprep.mubr.msk.bf16.mxu0 %vm68_vm0, %v163_v3  ;;  %v162_v4 = vld [vmem:[%s218_s1] sm:$0xff]  }
   0x4   :  { %149 = vmatprep.subr.bf16.mxu0 %v160_v1  ;;  %v132_v6 = vld [vmem:[%s220_s2] ss:$0 sm:$0xff] }
   0x7   :  { %150 = vmatpush3.bf16.msra.mxu0 %v160_v1 }
   0x8   :  { %151 = vmatprep.subr.bf16.mxu0 %v161_v2 }
   0xb   :  { %152 = vmatpush3.bf16.msra.mxu0 %v161_v2 }
   0xc   :  { %153 = vmatprep.subr.bf16.mxu0 %v162_v4 }
   0xf   :  { %154 = vmatpush3.bf16.msra.mxu0 %v162_v4 }
  0x12   :  { %156 = vmatmul.mubr.msk.bf16.vlgmr.msra.gmra.mxu0 %vm68_vm0, %v164_v5 }
  0xd2   :  { %v157_v7 = vpop.f32.mrf.mxu0 }
  0xd3   :  { %v118_v8 = vadd.f32 %v157_v7, %v132_v6 }
  0xd4   :  { %v109_v9 = vpop.f32.mrf.mxu0 }
  0xd5   :  { %126 = vst [vmem:[%s221_s3 + $0x10] sm:$0xff] %v118_v8  ;;  %v110_v10 = vadd.f32 %v132_v6, %v109_v9 }
  0xd6   :  { %v158_v11 = vpop.f32.mrf.mxu0 }
  0xd7   :  { %124 = vst [vmem:[%s221_s3] sm:$0xff] %v110_v10  ;;  %v121_v12 = vadd.f32 %v158_v11, %v132_v6 }
  0xd8   :  { %v112_v13 = vpop.f32.mrf.mxu0 }
  0xd9   :  { %127 = vst [vmem:[%s221_s3 + $0x18] sm:$0xff] %v121_v12  ;;  %v113_v14 = vadd.f32 %v132_v6, %v112_v13 }
  0xdb   :  { %125 = vst [vmem:[%s221_s3 + $0x8] sm:$0xff] %v113_v14 }

// kernel: vit_feature_extractor.3
= control target key start
LH: loop header
LB: loop body
LE: loop exit
PB: predicated region body
PF: predicated region fallthrough
CT: control target
= control target key end

     0   :  { %s3777_s0 = inlined_call_operand.vmem [shape: f32[32,128], index: 0, kind: input, shape index: {}]   ;;  %s3778_s1 = inlined_call_operand.vmem [shape: f32[2,1,128], index: 1, kind: input, shape index: {}]   ;;  %s3779_s2 = inlined_call_operand.vmem [shape: f32[2,1,128], index: 2, kind: input, shape index: {}]   ;;  %s3780_s3 = inlined_call_operand.hbm [shape: bf16[2,128,384], index: 3, kind: input, shape index: {}]   ;;  %s3781_s4 = inlined_call_operand.vmem [shape: f32[2,1,384], index: 4, kind: input, shape index: {}]   ;;  %s3782_s5 = inlined_call_operand.vmem [shape: bf16[2,128,128], index: 5, kind: input, shape index: {}]   ;;  %s3783_s6 = inlined_call_operand.vmem [shape: f32[2,1,128], index: 6, kind: input, shape index: {}]   ;;  %s3784_s7 = inlined_call_operand.vmem [shape: f32[2,1,128], index: 7, kind: input, shape index: {}]   ;;  %s3785_s8 = inlined_call_operand.vmem [shape: f32[2,1,128], index: 8, kind: input, shape index: {}]   ;;  %s3786_s9 = inlined_call_operand.vmem [shape: bf16[2,128,512], index: 9, kind: input, shape index: {}]   ;;  %s3787_s10 = inlined_call_operand.vmem [shape: f32[2,1,512], index: 10, kind: input, shape index: {}]   ;;  %s3788_s11 = inlined_call_operand.vmem [shape: bf16[2,512,128], index: 11, kind: input, shape index: {}]   ;;  %s3789_s12 = inlined_call_operand.vmem [shape: f32[2,1,128], index: 12, kind: input, shape index: {}]   ;;  %s3790_s13 = inlined_call_operand.hbm [shape: f32[32,128], index: 13, kind: output, shape index: {}]  }
   0x1   :  { %3797 = sst [smem:[#allocation15_spill]] %s3779_s2 }
   0x2   :  { %3798 = sst [smem:[#allocation16_spill]] %s3780_s3 }
   0x3   :  { %3799 = sst [smem:[#allocation17_spill]] %s3782_s5 }
   0x4   :  { %3800 = sst [smem:[#allocation18_spill]] %s3790_s13 }
   0x5   :  { %18 = vsyncpa [#allocation4], 0 }
   0x6   :  { %20 = vsyncpa [#allocation4 + $0x1], 0 }
   0x7   :  { %21 = vsyncpa [#allocation5], 0  ;;  %s3219_s25 = smov 0   ;;  %s3221_s26 = smov 0  }
   0x8   :  { %s3223_s27 = smov 0   ;;  %s3225_s28 = smov 0  }
   0x9   :  { %s3227_s29 = smov 0   ;;  %s3229_s30 = smov 0  }
   0xa LB: > { %3801 = sst [smem:[#allocation9_spill]] %s3122_s26  ;;  %s3791_s14 = sadd.s32 4294967295, %s3138_s30   ;;  %s3138_s30 = sphi %s3229_s30, %s27_s30   ;;  %s3134_s29 = sphi %s3227_s29, %s3826_s29   ;;  %s3130_s28 = sphi %s3225_s28, %s3825_s28   ;;  %s3126_s27 = sphi %s3223_s27, %s3824_s27   ;;  %s3122_s26 = sphi %s3221_s26, %s3823_s26   ;;  %s3118_s25 = sphi %s3219_s25, %s3822_s25  }
   0xb   : > { %3802 = sst [smem:[#allocation10_spill]] %s3126_s27  ;;  %s36_s15 = sadd.s32 1, %s3134_s29 }
   0xc   : > { %3803 = sst [smem:[#allocation11_spill]] %s3134_s29  ;;  %p37_p0 = scmp.ge.s32.totalorder %s36_s15, 2 }
   0xd   : > { %3804 = sst [smem:[#allocation12_spill]] %s3138_s30  ;;  %s124_s16 = sadd.s32 1, %s3126_s27 }
   0xe   : > { %p131_p1 = scmp.ne.s32.totalorder %s3126_s27, %s3122_s26  ;;  %p132_p2 = scmp.eq.s32.totalorder %s3138_s30, 0 }
   0xf   : > { %s3828_s15 = smov (%p37_p0, %s36_s15), 0  ;;  %p137_p4 = scmp.ne.s32.totalorder %s3122_s26, %s3118_s25 }
  0x10   : > { %3805 = sst [smem:[#allocation13_spill]] %s3828_s15  ;;  %p133_p3 = por %p132_p2, %p131_p1 }
  0x11   : > { %s121_s17 = ssub.s32 %s3134_s29, %s3828_s15  ;;  %p138_p5 = scmp.eq.s32.totalorder %s3791_s14, 0 }
  0x12   : > { %p122_p6 = scmp.eq.s32.totalorder %s121_s17, 0  ;;  %p2789_p8 = scmp.lt.s32.totalorder %s3138_s30, 2 }
  0x13   : > { %p3260_p7 = por %p138_p5, %p137_p4  ;;  %s442_s20 = sand.u32 1, %s3126_s27  }
  0x14   : > { %s3266_s19 = scalar_select %p122_p6, %s3126_s27, %s124_s16  }
  0x15   : > { %s2776_s21 = smul.u32 3072, %s3134_s29  ;;  %s3808_s3 = sld [smem:[#allocation16_spill]] }
  0x16   : > { %3807 = sst [smem:[#allocation14_spill]] %s3266_s19  ;;  %s2775_s22 = smul.u32 192, %s442_s20 }
  0x17   : > { %p3273_p9 = pnand %p2789_p8, %p133_p3  ;;  %s443_s15 = scalar_lea.sflag [#allocation4], %s442_s20 }
  0x18   : > { %s446_s17 = scalar_lea.vmem [#allocation3], %s2775_s22  ;;  %s3140_s29 = smov [#allocation3]  }
  0x19   : > { %s453_s14 = sshll.u32 %s446_s17, 4  ;;  %p3034_p10 = pneg %p3273_p9  ;;  %s454_s14 = int_to_ptr.vmem [resolvable:$true] %s453_s14 }
  0x1a   : > { %s3045_s16 = scalar_lea.vmem %s454_s14, 3072  ;;  %s3050_s19 = sshll.u32 %s3140_s29, 4  ;;  %s3051_s19 = int_to_ptr.vmem [resolvable:$false] %s3050_s19 }
  0x1b   : > { %s452_s13 = scalar_lea.hbm %s3808_s3, %s2776_s21  ;;  %p3046_p11 = scmp.ne.s32.totalorder %s454_s14, %s3045_s16 }
  0x1c   : > { %s3052_s23 = scalar_lea.vmem %s3051_s19, 6144  ;;  %p3053_p0 = scmp.lt.s32.totalorder %s454_s14, %s3051_s19 }
  0x1d   : > { %p3048_p12 = pnand %p3046_p11, %p3034_p10  ;;  %p3054_p1 = scmp.lt.s32.totalorder %s3052_s23, %s3045_s16 }
  0x1f   : > { %p3049_p13 = pneg %p3048_p12  ;;  %p3055_p2 = por %p3054_p1, %p3053_p0 }
  0x21   : > { %p3056_p3 = pnand %p3055_p2, %p3049_p13 }
  0x23   : > { %3059 = shalt.err (!%p3056_p3)
}
  0x24   : > { %s3141_s21 = smov 192   ;;  %s3142_s20 = smov 12  }
  0x25   : > { %2788 = dma.hbm_to_vmem [thread:$0]  (!%p3273_p9), %s452_s13, 3072, %s454_s14, %s443_s15, %s3141_s21, %s3141_s21, %s3142_s20  }
  0x26   : > { %p2507_p4 = scmp.ge.s32.totalorder %s3138_s30, 1  ;;  %p523_p5 = scmp.lt.s32.totalorder %s3138_s30, 3 }
  0x28   : > { %p524_p6 = pnand %p2507_p4, %p523_p5 }
  0x29   : > { %s529_s29 = sand.u32 (!%p524_p6), 1, %s3122_s26  }
  0x2a   : > { %527 = sbr.rel (%p524_p6) target bundleno = 2140 (0x85c), region = 72  ;;  %s530_s19 = scalar_lea.sflag (!%p524_p6), [#allocation4], %s529_s29 }
  0x2b   : > { %s2777_s22 = smul.u32 (!%p524_p6), 192, %s529_s29 }
  0x2d   : > { %s3284_s24 = scalar_lea.vmem (!%p524_p6), [#allocation3], %s2777_s22 }
  0x2f   : > { %3109 = dma.done.wait (%p3260_p7), %s530_s19, 3072  }
  0x30   : > { %3111 = vsyncadd (%p3260_p7), %s530_s19, 4294964224  ;;  %p623_p8 = scmp.lt.s32.totalorder %s3130_s28, 1  ;;  %s3811_s5 = sld [smem:[#allocation17_spill]] }
  0x31   : > { %p2515_p7 = scmp.ne.s32.totalorder %s3130_s28, 0 }
  0x32   : > { %s3292_s13 = scalar_select %p623_p8, %s3130_s28, 1 }
  0x34   : > { %s2778_s23 = smul.u32 3, %s3292_s13  ;;  %s2624_s21 = sshll.u32 %s3292_s13, 6 }
  0x35   : > { %s643_s25 = scalar_lea.vmem %s3784_s7, %s3292_s13  ;;  %s2625_s20 = sshll.u32 %s3292_s13, 8 }
  0x36   : > { %s3307_s22 = scalar_lea.vmem %s3811_s5, %s2624_s21  ;;  %s3316_s26 = scalar_lea.vmem %s3781_s4, %s2778_s23 }
  0x37   : > { %s3330_s5 = scalar_lea.vmem %s3786_s9, %s2625_s20  ;;  %s2512_s19 = sshll.u32 %s3292_s13, 2 }
  0x38   : > { %s3336_s3 = scalar_lea.vmem %s3787_s10, %s2512_s19  ;;  %s3341_s30 = scalar_lea.vmem %s3788_s11, %s2625_s20 }
  0x39   : > { %s663_s17 = scalar_lea.vmem %s3789_s12, %s3292_s13  ;;  %669 = sbr.rel (%p2515_p7) target bundleno = 65 (0x41), region = 80 }
  0x3e   : > { %v670_v0 = vld [vmem:[%s3777_s0] sm:$0xff]  ;;  %v671_v1 = vld [vmem:[%s3777_s0 + $0x8] sm:$0xff]  ;;  %v672_v2 = vld [vmem:[%s3777_s0 + $0x10] sm:$0xff] }
  0x3f   : > { %674 = vst [vmem:[#allocation6] sm:$0xff] %v670_v0  ;;  %675 = vst [vmem:[#allocation6 + $0x8] sm:$0xff] %v671_v1  ;;  %v673_v3 = vld [vmem:[%s3777_s0 + $0x18] sm:$0xff] }
  0x40   : > { %676 = vst [vmem:[#allocation6 + $0x10] sm:$0xff] %v672_v2  ;;  %677 = vst [vmem:[#allocation6 + $0x18] sm:$0xff] %v673_v3 }
  0x41 PF: > { %v2848_v8 = vld [vmem:[%s3284_s24 + $0xac] ss:$12 sps:$4 sm:$0xff]   ;;  %v2850_v9 = vld [vmem:[%s3284_s24 + $0xa8] ss:$12 sps:$4 sm:$0xff]   ;;  %v2853_v27 = vld [vmem:[%s3284_s24 + $0xb0] ss:$12 sps:$4 sm:$0xff]   ;;  %s3815_s29 = scalar_lea.vmem %s3783_s6, %s3292_s13  ;;  %s3816_s20 = scalar_lea.vmem %s3785_s8, %s3292_s13 }
  0x42   : > { %928 = vmatprep.subr.bf16.mxu0 %v2848_v8  ;;  %v2851_v26 = vld [vmem:[%s3284_s24 + $0x94] ss:$12 sps:$4 sm:$0xff]   ;;  %v2854_v28 = vld [vmem:[%s3284_s24 + $0x90] ss:$12 sps:$4 sm:$0xff]   ;;  %2711 = vmatprep.subr.bf16.mxu1 %v2853_v27  ;;  %v2857_v30 = vld [vmem:[%s3284_s24 + $0x98] ss:$12 sps:$4 sm:$0xff]  }
  0x43   : > { %929 = vmatpush1.bf16.msra.mxu0 %v2850_v9  ;;  %2712 = vmatpush3.bf16.msra.mxu1 %v2853_v27  ;;  %v2855_v29 = vld [vmem:[%s3284_s24 + $0x7c] ss:$12 sps:$4 sm:$0xff]   ;;  %v2858_v31 = vld [vmem:[%s3284_s24 + $0x78] ss:$12 sps:$4 sm:$0xff]   ;;  %v2861_v33 = vld [vmem:[%s3284_s24 + $0x80] ss:$12 sps:$4 sm:$0xff]  }
  0x44   : > { %930 = vmatprep.subr.bf16.mxu0 %v2851_v26  ;;  %2713 = vmatprep.subr.bf16.mxu1 %v2857_v30  ;;  %v2859_v32 = vld [vmem:[%s3284_s24 + $0x64] ss:$12 sps:$4 sm:$0xff]   ;;  %v2862_v34 = vld [vmem:[%s3284_s24 + $0x60] ss:$12 sps:$4 sm:$0xff]   ;;  %v2865_v36 = vld [vmem:[%s3284_s24 + $0x68] ss:$12 sps:$4 sm:$0xff]  }
  0x45   : > { %v2863_v35 = vld [vmem:[%s3284_s24 + $0x4c] ss:$12 sps:$4 sm:$0xff]   ;;  %v2866_v37 = vld [vmem:[%s3284_s24 + $0x48] ss:$12 sps:$4 sm:$0xff]   ;;  %v2869_v39 = vld [vmem:[%s3284_s24 + $0x50] ss:$12 sps:$4 sm:$0xff]  }
  0x46   : > { %v3360_v4 = vld [vmem:[#allocation6] sm:$0xff]  ;;  %v3364_v6 = vld [vmem:[#allocation6 + $0x8] sm:$0xff]  ;;  %v2870_v40 = vld [vmem:[%s3284_s24 + $0x30] ss:$12 sps:$4 sm:$0xff]   ;;  %v3143_v43 = vmov 0   ;;  %s3813_s16 = sld [smem:[#allocation15_spill]] }
  0x47   : > { %v3362_v5 = vld [vmem:[#allocation6 + $0x10] sm:$0xff]  ;;  %684 = vadd.xlane.f32.xlu0 %v3360_v4  ;;  %v3368_v7 = vld [vmem:[#allocation6 + $0x18] sm:$0xff]  ;;  %931 = vmatpush1.bf16.msra.mxu0 %v2854_v28  ;;  %v2877_v46 = vld [vmem:[%s3284_s24 + $0x20] ss:$12 sps:$4 sm:$0xff]   ;;  %vm3145_vm0 = vmmov 0   ;;  %vm1122_vm1 = vcmask 130048  }
  0x48   : > { %688 = vadd.xlane.f32.xlu1 %v3362_v5  ;;  %932 = vmatprep.subr.bf16.mxu0 %v2855_v29  ;;  %v2867_v38 = vld [vmem:[%s3284_s24 + $0x34] ss:$12 sps:$4 sm:$0xff]   ;;  %v2871_v41 = vld [vmem:[%s3284_s24 + $0x1c] ss:$12 sps:$4 sm:$0xff]   ;;  %v2873_v42 = vld [vmem:[%s3284_s24 + $0x38] ss:$12 sps:$4 sm:$0xff]  }
  0x49   : > { %2714 = vmatpush3.bf16.msra.mxu1 %v2857_v30  ;;  %960 = vmatprep.mubr.bf16.mxu0 %v3143_v43  ;;  %v2874_v44 = vld [vmem:[%s3284_s24 + $0x18] ss:$12 sps:$4 sm:$0xff]   ;;  %v2878_v47 = vld [vmem:[%s3284_s24] ss:$12 sps:$4 sm:$0xff]   ;;  %v2879_v48 = vld [vmem:[%s3284_s24 + $0x8] ss:$12 sps:$4 sm:$0xff]  }
  0x4a   : > { %2715 = vmatprep.subr.bf16.mxu1 %v2861_v33  ;;  %v2875_v45 = vld [vmem:[%s3284_s24 + $0x4] ss:$12 sps:$4 sm:$0xff]   ;;  %s3812_s24 = scalar_lea.vmem %s3778_s1, %s3292_s13  ;;  %v783_v26 = vld [vmem:[%s3316_s26] sm:$0x7] }
  0x4b   : > { %686 = vadd.xlane.f32.xlu0 %v3364_v6  ;;  %933 = vmatpush1.bf16.msra.mxu0 %v2858_v31  ;;  %v2516_v63 = vld [vmem:[%s3812_s24] ss:$0 sm:$0xff] }
  0x4c   : > { %690 = vadd.xlane.f32.xlu1 %v3368_v7  ;;  %934 = vmatprep.subr.bf16.mxu0 %v2859_v32  ;;  %s3814_s21 = scalar_lea.vmem %s3813_s16, %s3292_s13  ;;  %s3817_s13 = sld [smem:[#allocation12_spill]] }
  0x4d   : > { %2716 = vmatpush3.bf16.msra.mxu1 %v2861_v33  ;;  %v2517_v8 = vld [vmem:[%s3814_s21] ss:$0 sm:$0xff] }
  0x4e   : > { %2717 = vmatprep.subr.bf16.mxu1 %v2865_v36 }
  0x4f   : > { %935 = vmatpush1.bf16.msra.mxu0 %v2862_v34 }
  0x50   : > { %936 = vmatprep.subr.bf16.mxu0 %v2863_v35 }
  0x51   : > { %2718 = vmatpush3.bf16.msra.mxu1 %v2865_v36 }
  0x52   : > { %2719 = vmatprep.subr.bf16.mxu1 %v2869_v39  ;;  %s3818_s27 = sadd.s32 4294967295, %s3817_s13  }
  0x53   : > { %937 = vmatpush1.bf16.msra.mxu0 %v2866_v37  ;;  %p3743_p9 = scmp.eq.s32.totalorder %s3818_s27, 1 }
  0x54   : > { %938 = vmatprep.subr.bf16.mxu0 %v2867_v38 }
  0x55   : > { %2720 = vmatpush3.bf16.msra.mxu1 %v2869_v39 }
  0x56   : > { %2721 = vmatprep.subr.bf16.mxu1 %v2873_v42 }
  0x57   : > { %939 = vmatpush1.bf16.msra.mxu0 %v2870_v40 }
  0x58   : > { %940 = vmatprep.subr.bf16.mxu0 %v2871_v41 }
  0x59   : > { %2722 = vmatpush3.bf16.msra.mxu1 %v2873_v42 }
  0x5a   : > { %2723 = vmatprep.subr.bf16.mxu1 %v2877_v46 }
  0x5b   : > { %941 = vmatpush1.bf16.msra.mxu0 %v2874_v44 }
  0x5c   : > { %942 = vmatprep.subr.bf16.mxu0 %v2875_v45 }
  0x5d   : > { %2724 = vmatpush3.bf16.msra.mxu1 %v2877_v46 }
  0x5e   : > { %2725 = vmatprep.subr.bf16.mxu1 %v2879_v48 }
  0x5f   : > { %943 = vmatpush1.bf16.msra.mxu0 %v2878_v47 }
  0x61   : > { %2726 = vmatpush3.bf16.msra.mxu1 %v2879_v48 }
  0xd0   : > { %v685_v10 = vpop.xlane.xlu0 %684 }
  0xd1   : > { %v689_v11 = vpop.xlane.xlu1 %688  ;;  %v693_v12 = vmul.f32 0.0078125, %v685_v10 }
  0xd2   : > { %v695_v13 = vmul.f32 0.0078125, %v689_v11 }
  0xd3   : > { %v3375_v14 = vsub.f32 %v3360_v4, %v693_v12 }
  0xd4   : > { %v3378_v15 = vsub.f32 %v3362_v5, %v695_v13  ;;  %v687_v16 = vpop.xlane.xlu0 %686 }
  0xd5   : > { %v691_v17 = vpop.xlane.xlu1 %690  ;;  %v694_v18 = vmul.f32 0.0078125, %v687_v16  ;;  %v701_v19 = vmul.f32 %v3375_v14, %v3375_v14 }
  0xd6   : > { %v696_v20 = vmul.f32 0.0078125, %v691_v17  ;;  %v703_v23 = vmul.f32 %v3378_v15, %v3378_v15 }
  0xd7   : > { %v3383_v21 = vsub.f32 %v3364_v6, %v694_v18  ;;  %705 = vadd.xlane.f32.xlu0 %v701_v19 }
  0xd8   : > { %v3386_v22 = vsub.f32 %v3368_v7, %v696_v20 }
  0xd9   : > { %v702_v24 = vmul.f32 %v3383_v21, %v3383_v21 }
  0xda   : > { %v704_v25 = vmul.f32 %v3386_v22, %v3386_v22 }
  0xdb   : > { %709 = vadd.xlane.f32.xlu0 %v703_v23  ;;  %707 = vadd.xlane.f32.xlu1 %v702_v24 }
  0xdf   : > { %711 = vadd.xlane.f32.xlu1 %v704_v25 }
 0x160   : > { %v706_v49 = vpop.xlane.xlu0 %705 }
 0x161   : > { %v713_v50 = vmul.f32 0.0078125, %v706_v49 }
 0x163   : > { %v717_v51 = vadd.f32 1e-05, %v713_v50 }
 0x164   : > { %v708_v52 = vpop.xlane.xlu1 %707  ;;  %v710_v53 = vpop.xlane.xlu0 %709 }
 0x165   : > { %2968 = vrsqrt.f32 %v717_v51  ;;  %v714_v54 = vmul.f32 0.0078125, %v708_v52  ;;  %v715_v55 = vmul.f32 0.0078125, %v710_v53 }
 0x167   : > { %v718_v56 = vadd.f32 1e-05, %v714_v54  ;;  %v719_v57 = vadd.f32 1e-05, %v715_v55 }
 0x168   : > { %v712_v58 = vpop.xlane.xlu1 %711 }
 0x169   : > { %2970 = vrsqrt.f32 %v718_v56  ;;  %v716_v59 = vmul.f32 0.0078125, %v712_v58 }
 0x16a   : > { %2972 = vrsqrt.f32 %v719_v57 }
 0x16b   : > { %v720_v60 = vadd.f32 1e-05, %v716_v59 }
 0x16d   : > { %2974 = vrsqrt.f32 %v720_v60 }
 0x172   : > { %v2969_v61 = vpop.eup %2968 }
 0x173   : > { %v725_v62 = vmul.f32 %v2969_v61, %v3375_v14 }
 0x175   : > { %v735_v3 = vmul.f32 %v2516_v63, %v725_v62 }
 0x176   : > { %v2971_v0 = vpop.eup %2970 }
 0x177   : > { %v2973_v1 = vpop.eup %2972  ;;  %v726_v2 = vmul.f32 %v2971_v0, %v3383_v21  ;;  %v745_v12 = vadd.f32 %v2517_v8, %v735_v3 }
 0x178   : > { %v727_v9 = vmul.f32 %v2973_v1, %v3378_v15  ;;  %v3144_v15 = vmov 0.0  }
 0x179   : > { %v736_v10 = vmul.f32 %v2516_v63, %v726_v2  ;;  %2731 = vmatprep.subr.bf16.mxu0 %v3144_v15  ;;  %2743 = vmatprep.subr.bf16.mxu1 %v3144_v15 }
 0x17a   : > { %v2975_v11 = vpop.eup %2974  ;;  %v737_v16 = vmul.f32 %v2516_v63, %v727_v9 }
 0x17b   : > { %v746_v13 = vadd.f32 %v2517_v8, %v736_v10  ;;  %v728_v14 = vmul.f32 %v2975_v11, %v3386_v22  ;;  %v785_v22 = vlaneseq }
 0x17c   : > { %v747_v19 = vadd.f32 %v2517_v8, %v737_v16 }
 0x17d   : > { %v749_v17 = vpack.c.bf16 %v746_v13, %v745_v12  ;;  %v738_v18 = vmul.f32 %v2516_v63, %v728_v14  ;;  %v3434_v23 = vshrl.u32 %v785_v22, 7 }
 0x17f   : > { %961 = vmatmul.mubr.bf16.vlgmr.msra.gmra.mxu0 %v749_v17  ;;  %2727 = vmatprep.mubr.bf16.mxu1 %v749_v17  ;;  %v748_v20 = vadd.f32 %v2517_v8, %v738_v18  ;;  %v791_v24 = vsub.s32 1, %v3434_v23  ;;  %v795_v31 = vsub.s32 2, %v3434_v23  ;;  %v787_v32 = vsub.s32 0, %v3434_v23 }
 0x180   : > { %970 = vmatprep.mubr.bf16.mxu0 %v3143_v43 }
 0x181   : > { %v750_v21 = vpack.c.bf16 %v748_v20, %v747_v19  ;;  %v792_v28 = vrot.slane %v783_v26, %v791_v24  ;;  %v796_v39 = vrot.slane %v783_v26, %v795_v31  ;;  %v788_v41 = vrot.slane %v783_v26, %v787_v32 }
 0x183   : > { %2728 = vmatmul.mubr.bf16.vlgmr.msra.gmra.mxu1 %v750_v21 }
 0x184   : > { %2745 = vmatprep.mubr.msk.bf16.mxu1 %vm3145_vm0, %v3144_v15 }
 0x187   : > { %971 = vmatmul.mubr.bf16.gmra.mxu0 %v750_v21 }
 0x188   : > { %2733 = vmatprep.mubr.msk.bf16.mxu0 %vm3145_vm0, %v3144_v15 }
 0x23f   : > { %v962_v25 = vpop.f32.mrf.mxu0 }
 0x240   : > { %v963_v50 = vadd.f32 %v962_v25, %v788_v41 }
 0x241   : > { %v964_v27 = vpop.f32.mrf.mxu0 }
 0x242   : > { %v965_v35 = vadd.f32 %v964_v27, %v792_v28 }
 0x243   : > { %v966_v29 = vpop.f32.mrf.mxu0  ;;  %v2729_v30 = vpop.f32.mrf.mxu1 }
 0x244   : > { %v967_v47 = vadd.f32 %v966_v29, %v788_v41  ;;  %v1024_v59 = vadd.f32 %v2729_v30, %v796_v39 }
 0x245   : > { %v968_v33 = vpop.f32.mrf.mxu0  ;;  %v1015_v34 = vpop.f32.mrf.mxu1 }
 0x246   : > { %v969_v36 = vadd.f32 %v968_v33, %v792_v28  ;;  %v1016_v45 = vadd.f32 %v1015_v34, %v796_v39  ;;  %v1030_v54 = vpack.c.bf16 %v967_v47, %v963_v50  ;;  %v2882_v47 = vld [vmem:[%s3307_s22 + $0x28] sm:$0xff]   ;;  %v2885_v50 = vld [vmem:[%s3307_s22 + $0x10] sm:$0xff]  }
 0x247   : > { %v972_v37 = vpop.f32.mrf.mxu0  ;;  %v2730_v38 = vpop.f32.mrf.mxu1 }
 0x248   : > { %v1032_v40 = vpack.c.bf16 %v969_v36, %v965_v35  ;;  %v1027_v57 = vadd.f32 %v2730_v38, %v796_v39  ;;  %v973_v58 = vadd.f32 %v972_v37, %v788_v41 }
 0x249   : > { %v974_v42 = vpop.f32.mrf.mxu0  ;;  %v1018_v44 = vpop.f32.mrf.mxu1 }
 0x24a   : > { %v1019_v46 = vadd.f32 %v1018_v44, %v796_v39  ;;  %2732 = vmatpush3.bf16.xpose.msra.mxu0 %v1032_v40  ;;  %v975_v52 = vadd.f32 %v974_v42, %v792_v28  ;;  %v1035_v61 = vpack.c.bf16 %v1027_v57, %v1024_v59 }
 0x24b   : > { %v976_v48 = vpop.f32.mrf.mxu0  ;;  %2737 = vmatprep.subr.bf16.mxu0 %v3144_v15 }
 0x24c   : > { %v1034_v49 = vpack.c.bf16 %v1019_v46, %v1016_v45  ;;  %v977_v56 = vadd.f32 %v976_v48, %v788_v41  ;;  %v2880_v45 = vld [vmem:[%s3307_s22 + $0x38] sm:$0xff]   ;;  %v2881_v46 = vld [vmem:[%s3307_s22 + $0x30] sm:$0xff]   ;;  %v2883_v48 = vld [vmem:[%s3307_s22 + $0x20] sm:$0xff]  }
 0x24d   : > { %v978_v51 = vpop.f32.mrf.mxu0 }
 0x24e   : > { %v979_v53 = vadd.f32 %v978_v51, %v792_v28  ;;  %2744 = vmatpush3.bf16.msra.mxu1 %v1034_v49  ;;  %v1031_v60 = vpack.c.bf16 %v977_v56, %v973_v58  ;;  %v2884_v49 = vld [vmem:[%s3307_s22 + $0x18] sm:$0xff]   ;;  %v2886_v51 = vld [vmem:[%s3307_s22 + $0x8] sm:$0xff]  }
 0x24f   : > { %2755 = vmatprep.subr.bf16.mxu1 %v2880_v45 }
 0x250   : > { %v1033_v55 = vpack.c.bf16 %v979_v53, %v975_v52  ;;  %v2887_v52 = vld [vmem:[%s3307_s22] sm:$0xff]  }
 0x251   : > { %2734 = vmatmul.mubr.bf16.vlgmr.msra.gmra.mxu0 %v1030_v54 }
 0x252   : > { %2738 = vmatpush3.bf16.xpose.msra.mxu0 %v1033_v55  ;;  %2739 = vmatprep.mubr.msk.bf16.mxu0 %vm3145_vm0, %v3144_v15 }
 0x253   : > { %2749 = vmatprep.subr.bf16.mxu0 %v3144_v15 }
 0x259   : > { %2740 = vmatmul.mubr.bf16.vlgmr.msra.gmra.mxu0 %v1031_v60 }
 0x25a   : > { %2750 = vmatpush3.bf16.msra.mxu0 %v1035_v61  ;;  %2751 = vmatprep.mubr.msk.bf16.mxu0 %vm3145_vm0, %v3144_v15 }
 0x311   : > { %v1070_v62 = vpop.f32.mrf.mxu0 }
 0x312   : > { %v1118_v63 = vmul.f32 0.088388346, %v1070_v62 }
 0x313   : > { %v2735_v0 = vpop.f32.mrf.mxu0 }
 0x314   : > { %v1123_v1 = vsel %vm1122_vm1, %v1118_v63, -inf }
 0x315   : > { %1124 = vmax.xlane.f32.xlu0 %v1123_v1  ;;  %v1073_v2 = vpop.f32.mrf.mxu0 }
 0x316   : > { %v1119_v3 = vmul.f32 0.088388346, %v1073_v2 }
 0x317   : > { %v2736_v8 = vpop.f32.mrf.mxu0 }
 0x318   : > { %v1126_v9 = vsel %vm1122_vm1, %v1119_v3, -inf }
 0x319   : > { %1127 = vmax.xlane.f32.xlu1 %v1126_v9  ;;  %v1111_v10 = vpop.f32.mrf.mxu0 }
 0x31a   : > { %v1120_v11 = vmul.f32 0.088388346, %v1111_v10 }
 0x31b   : > { %v2741_v12 = vpop.f32.mrf.mxu0 }
 0x31c   : > { %v1129_v13 = vsel %vm1122_vm1, %v1120_v11, -inf }
 0x31d   : > { %1130 = vmax.xlane.f32.xlu0 %v1129_v13  ;;  %v1114_v14 = vpop.f32.mrf.mxu0 }
 0x31e   : > { %v1121_v16 = vmul.f32 0.088388346, %v1114_v14 }
 0x31f   : > { %v2742_v17 = vpop.f32.mrf.mxu0 }
 0x320   : > { %v1132_v18 = vsel %vm1122_vm1, %v1121_v16, -inf  ;;  %v2544_v17 = vld [vmem:[%s3815_s29] ss:$0 sm:$0xff] }
 0x321   : > { %1133 = vmax.xlane.f32.xlu1 %v1132_v18 }
 0x39e   : > { %v1125_v19 = vpop.xlane.xlu0 %1124 }
 0x39f   : > { %v1135_v20 = vsub.f32 %v1118_v63, %v1125_v19 }
 0x3a1   : > { %v1139_v21 = vmul.f32 1.442695, %v1135_v20 }
 0x3a2   : > { %v1128_v15 = vpop.xlane.xlu1 %1127 }
 0x3a3   : > { %2976 = vpow2.f32 %v1139_v21  ;;  %v1136_v22 = vsub.f32 %v1119_v3, %v1128_v15 }
 0x3a5   : > { %v1141_v25 = vmul.f32 1.442695, %v1136_v22 }
 0x3a6   : > { %v1131_v26 = vpop.xlane.xlu0 %1130 }
 0x3a7   : > { %2978 = vpow2.f32 %v1141_v25  ;;  %v1137_v27 = vsub.f32 %v1120_v11, %v1131_v26 }
 0x3a9   : > { %v1143_v28 = vmul.f32 1.442695, %v1137_v27 }
 0x3aa   : > { %v1134_v29 = vpop.xlane.xlu1 %1133 }
 0x3ab   : > { %2980 = vpow2.f32 %v1143_v28  ;;  %v1138_v30 = vsub.f32 %v1121_v16, %v1134_v29 }
 0x3ad   : > { %v1145_v33 = vmul.f32 1.442695, %v1138_v30  ;;  %v2890_v30 = vld [vmem:[%s3330_s5 + $0xe4] ss:$16 sps:$4 sm:$0xff]  }
 0x3ae   : > { %1673 = vmatprep.subr.bf16.mxu0 %v2890_v30 }
 0x3af   : > { %2982 = vpow2.f32 %v1145_v33  ;;  %v2891_v33 = vld [vmem:[%s3330_s5 + $0xe8] ss:$16 sps:$4 sm:$0xff]  }
 0x3b0   : > { %v2977_v34 = vpop.eup %2976 }
 0x3b1   : > { %v1147_v35 = vsel %vm1122_vm1, %v2977_v34, 0.0 }
 0x3b2   : > { %1148 = vadd.xlane.f32.xlu0 %v1147_v35 }
 0x3b4   : > { %v2979_v36 = vpop.eup %2978 }
 0x3b5   : > { %v1150_v37 = vsel %vm1122_vm1, %v2979_v36, 0.0  ;;  %v1159_v38 = vpack.c.bf16 %v2979_v36, %v2977_v34  ;;  %v2893_v34 = vld [vmem:[%s3330_s5 + $0xec] ss:$16 sps:$4 sm:$0xff]  }
 0x3b6   : > { %1151 = vadd.xlane.f32.xlu1 %v1150_v37 }
 0x3b7   : > { %2746 = vmatmul.mubr.msk.bf16.vlgmr.msra.gmra.mxu1 %vm1122_vm1, %v1159_v38 }
 0x3b8   : > { %v2981_v39 = vpop.eup %2980  ;;  %2756 = vmatpush3.bf16.msra.mxu1 %v2880_v45 }
 0x3b9   : > { %v1153_v40 = vsel %vm1122_vm1, %v2981_v39, 0.0  ;;  %2757 = vmatprep.subr.bf16.mxu1 %v2881_v46 }
 0x3ba   : > { %1154 = vadd.xlane.f32.xlu0 %v1153_v40 }
 0x3bc   : > { %v2983_v41 = vpop.eup %2982  ;;  %2758 = vmatpush3.bf16.msra.mxu1 %v2881_v46 }
 0x3bd   : > { %v1156_v42 = vsel %vm1122_vm1, %v2983_v41, 0.0  ;;  %v1160_v44 = vpack.c.bf16 %v2983_v41, %v2981_v39  ;;  %2759 = vmatprep.subr.bf16.mxu1 %v2882_v47 }
 0x3be   : > { %1157 = vadd.xlane.f32.xlu1 %v1156_v42 }
 0x3bf   : > { %2752 = vmatmul.mubr.msk.bf16.vlgmr.msra.gmra.mxu0 %vm1122_vm1, %v1160_v44 }
 0x3c0   : > { %1705 = vmatprep.mubr.bf16.mxu0 %v3143_v43  ;;  %2760 = vmatpush3.bf16.msra.mxu1 %v2882_v47 }
 0x3c1   : > { %2761 = vmatprep.subr.bf16.mxu1 %v2883_v48 }
 0x3c4   : > { %2762 = vmatpush3.bf16.msra.mxu1 %v2883_v48 }
 0x3c5   : > { %2763 = vmatprep.subr.bf16.mxu1 %v2884_v49 }
 0x3c8   : > { %2764 = vmatpush3.bf16.msra.mxu1 %v2884_v49  ;;  %v2896_v49 = vld [vmem:[%s3330_s5 + $0xc4] ss:$16 sps:$4 sm:$0xff]  }
 0x3c9   : > { %2765 = vmatprep.subr.bf16.mxu1 %v2885_v50 }
 0x3cc   : > { %2766 = vmatpush3.bf16.msra.mxu1 %v2885_v50  ;;  %v2899_v50 = vld [vmem:[%s3330_s5 + $0xcc] ss:$16 sps:$4 sm:$0xff]  }
 0x3cd   : > { %2767 = vmatprep.subr.bf16.mxu1 %v2886_v51 }
 0x3d0   : > { %2768 = vmatpush3.bf16.msra.mxu1 %v2886_v51  ;;  %v2894_v51 = vld [vmem:[%s3330_s5 + $0xc0] ss:$16 sps:$4 sm:$0xff]  }
 0x3d1   : > { %2769 = vmatprep.subr.bf16.mxu1 %v2887_v52 }
 0x3d4   : > { %2770 = vmatpush3.bf16.msra.mxu1 %v2887_v52  ;;  %v2897_v52 = vld [vmem:[%s3330_s5 + $0xc8] ss:$16 sps:$4 sm:$0xff]  }
 0x3d5   : > { %1726 = vmatprep.subr.bf16.mxu1 %v2893_v34 }
 0x43b   : > { %v1149_v53 = vpop.xlane.xlu0 %1148 }
 0x43c   : > { %2984 = vrcp.f32 %v1149_v53  ;;  %v2902_v53 = vld [vmem:[%s3330_s5 + $0xa4] ss:$16 sps:$4 sm:$0xff]  }
 0x43f   : > { %v1152_v54 = vpop.xlane.xlu1 %1151 }
 0x440   : > { %2986 = vrcp.f32 %v1152_v54  ;;  %v2905_v54 = vld [vmem:[%s3330_s5 + $0xac] ss:$16 sps:$4 sm:$0xff]  }
 0x443   : > { %v1155_v55 = vpop.xlane.xlu0 %1154 }
 0x444   : > { %2988 = vrcp.f32 %v1155_v55  ;;  %v2900_v55 = vld [vmem:[%s3330_s5 + $0xa0] ss:$16 sps:$4 sm:$0xff]  }
 0x447   : > { %v1158_v56 = vpop.xlane.xlu1 %1157 }
 0x448   : > { %2990 = vrcp.f32 %v1158_v56  ;;  %v2903_v56 = vld [vmem:[%s3330_s5 + $0xa8] ss:$16 sps:$4 sm:$0xff]  }
 0x449   : > { %v2985_v59 = vpop.eup %2984 }
 0x44d   : > { %v2987_v60 = vpop.eup %2986 }
 0x451   : > { %v2989_v8 = vpop.eup %2988 }
 0x455   : > { %v2991_v9 = vpop.eup %2990 }
 0x477   : > { %v1198_v57 = vpop.f32.mrf.mxu1 }
 0x478   : > { %v1253_v62 = vmul.f32 %v2985_v59, %v1198_v57  ;;  %v2908_v57 = vld [vmem:[%s3330_s5 + $0x84] ss:$16 sps:$4 sm:$0xff]   ;;  %v2906_v59 = vld [vmem:[%s3330_s5 + $0x80] ss:$16 sps:$4 sm:$0xff]  }
 0x479   : > { %v2747_v58 = vpop.f32.mrf.mxu1 }
 0x47a   : > { %v2911_v58 = vld [vmem:[%s3330_s5 + $0x8c] ss:$16 sps:$4 sm:$0xff]  }
 0x47b   : > { %v1201_v61 = vpop.f32.mrf.mxu1 }
 0x47c   : > { %v1254_v63 = vmul.f32 %v2987_v60, %v1201_v61  ;;  %v2909_v60 = vld [vmem:[%s3330_s5 + $0x88] ss:$16 sps:$4 sm:$0xff]   ;;  %v2912_v61 = vld [vmem:[%s3330_s5 + $0x60] ss:$16 sps:$4 sm:$0xff]  }
 0x47d   : > { %v2748_v0 = vpop.f32.mrf.mxu1 }
 0x47e   : > { %v1265_v1 = vpack.c.bf16 %v1254_v63, %v1253_v62  ;;  %v2914_v62 = vld [vmem:[%s3330_s5 + $0x64] ss:$16 sps:$4 sm:$0xff]   ;;  %v2915_v63 = vld [vmem:[%s3330_s5 + $0x68] ss:$16 sps:$4 sm:$0xff]   ;;  %v2917_v0 = vld [vmem:[%s3330_s5 + $0x6c] ss:$16 sps:$4 sm:$0xff]  }
 0x47f   : > { %v1242_v2 = vpop.f32.mrf.mxu0 }
 0x480   : > { %2771 = vmatprep.mubr.bf16.mxu1 %v1265_v1  ;;  %v1255_v11 = vmul.f32 %v2989_v8, %v1242_v2  ;;  %v2920_v1 = vld [vmem:[%s3330_s5 + $0x44] ss:$16 sps:$4 sm:$0xff]   ;;  %v2923_v2 = vld [vmem:[%s3330_s5 + $0x4c] ss:$16 sps:$4 sm:$0xff]   ;;  %v2921_v8 = vld [vmem:[%s3330_s5 + $0x48] ss:$16 sps:$4 sm:$0xff]  }
 0x481   : > { %v2753_v3 = vpop.f32.mrf.mxu0 }
 0x482   : > { %v2918_v3 = vld [vmem:[%s3330_s5 + $0x40] ss:$16 sps:$4 sm:$0xff]  }
 0x483   : > { %v1245_v10 = vpop.f32.mrf.mxu0 }
 0x484   : > { %v1256_v12 = vmul.f32 %v2991_v9, %v1245_v10  ;;  %v2926_v9 = vld [vmem:[%s3330_s5 + $0x24] ss:$16 sps:$4 sm:$0xff]   ;;  %v2929_v10 = vld [vmem:[%s3330_s5 + $0x2c] ss:$16 sps:$4 sm:$0xff]  }
 0x485   : > { %v2754_v13 = vpop.f32.mrf.mxu0 }
 0x486   : > { %v1266_v14 = vpack.c.bf16 %v1256_v12, %v1255_v11  ;;  %v2924_v11 = vld [vmem:[%s3330_s5 + $0x20] ss:$16 sps:$4 sm:$0xff]   ;;  %v2927_v12 = vld [vmem:[%s3330_s5 + $0x28] ss:$16 sps:$4 sm:$0xff]   ;;  %v2932_v13 = vld [vmem:[%s3330_s5 + $0x4] ss:$16 sps:$4 sm:$0xff]  }
 0x488   : > { %2772 = vmatmul.mubr.bf16.vlgmr.msra.gmra.mxu1 %v1266_v14  ;;  %v2935_v14 = vld [vmem:[%s3330_s5 + $0xc] ss:$16 sps:$4 sm:$0xff]  }
 0x489   : > { %1758 = vmatprep.mubr.bf16.mxu1 %v3143_v43  ;;  %1727 = vmatpush1.bf16.msra.mxu1 %v2891_v33 }
 0x48a   : > { %1728 = vmatprep.subr.bf16.mxu1 %v2899_v50 }
 0x48d   : > { %1729 = vmatpush1.bf16.msra.mxu1 %v2897_v52 }
 0x48e   : > { %1730 = vmatprep.subr.bf16.mxu1 %v2905_v54 }
 0x491   : > { %1731 = vmatpush1.bf16.msra.mxu1 %v2903_v56  ;;  %v2938_v56 = vld [vmem:[%s3341_s30 + $0x38] sm:$0xff]  }
 0x492   : > { %1732 = vmatprep.subr.bf16.mxu1 %v2911_v58  ;;  %v2941_v58 = vld [vmem:[%s3341_s30 + $0xf0] sm:$0xff]  }
 0x495   : > { %1733 = vmatpush1.bf16.msra.mxu1 %v2909_v60  ;;  %v2943_v60 = vld [vmem:[%s3341_s30 + $0xb0] sm:$0xff]  }
 0x496   : > { %1734 = vmatprep.subr.bf16.mxu1 %v2917_v0  ;;  %v2947_v0 = vld [vmem:[%s3341_s30 + $0xa8] sm:$0xff]  }
 0x499   : > { %1735 = vmatpush1.bf16.msra.mxu1 %v2915_v63  ;;  %v2946_v63 = vld [vmem:[%s3341_s30 + $0x28] sm:$0xff]  }
 0x49a   : > { %1736 = vmatprep.subr.bf16.mxu1 %v2923_v2  ;;  %v2949_v2 = vld [vmem:[%s3341_s30 + $0xe0] sm:$0xff]  }
 0x49d   : > { %1737 = vmatpush1.bf16.msra.mxu1 %v2921_v8  ;;  %v2951_v8 = vld [vmem:[%s3341_s30 + $0xa0] sm:$0xff]  }
 0x49e   : > { %1738 = vmatprep.subr.bf16.mxu1 %v2929_v10  ;;  %v2953_v10 = vld [vmem:[%s3341_s30 + $0xd8] sm:$0xff]  }
 0x4a1   : > { %1739 = vmatpush1.bf16.msra.mxu1 %v2927_v12  ;;  %v2955_v12 = vld [vmem:[%s3341_s30 + $0x98] sm:$0xff]  }
 0x4a2   : > { %1740 = vmatprep.subr.bf16.mxu1 %v2935_v14  ;;  %v2957_v14 = vld [vmem:[%s3341_s30 + $0xd0] sm:$0xff]  }
 0x548   : > { %v2773_v16 = vpop.f32.mrf.mxu1 }
 0x549   : > { %v1381_v21 = vadd.f32 %v2773_v16, %v2544_v17  ;;  %v2930_v16 = vld [vmem:[%s3330_s5] ss:$16 sps:$4 sm:$0xff]  }
 0x54a   : > { %v1372_v18 = vpop.f32.mrf.mxu1 }
 0x54b   : > { %v1373_v19 = vadd.f32 %v2544_v17, %v1372_v18  ;;  %v3478_v26 = vadd.f32 %v1381_v21, %v3362_v5 }
 0x54c   : > { %v2774_v20 = vpop.f32.mrf.mxu1 }
 0x54d   : > { %v3474_v15 = vadd.f32 %v1373_v19, %v3360_v4  ;;  %v1384_v27 = vadd.f32 %v2774_v20, %v2544_v17  ;;  %v2888_v4 = vld [vmem:[%s3330_s5 + $0xe0] ss:$16 sps:$4 sm:$0xff]  }
 0x54e   : > { %v1375_v22 = vpop.f32.mrf.mxu1  ;;  %1674 = vmatpush1.bf16.msra.mxu0 %v2888_v4 }
 0x54f   : > { %v1376_v25 = vadd.f32 %v2544_v17, %v1375_v22  ;;  %1393 = vadd.xlane.f32.xlu0 %v3474_v15  ;;  %v3486_v29 = vadd.f32 %v1384_v27, %v3368_v7  ;;  %1675 = vmatprep.subr.bf16.mxu0 %v2896_v49  ;;  %v2933_v17 = vld [vmem:[%s3330_s5 + $0x8] ss:$16 sps:$4 sm:$0xff]  }
 0x550   : > { %1741 = vmatpush1.bf16.msra.mxu1 %v2933_v17  ;;  %v2959_v17 = vld [vmem:[%s3341_s30 + $0x90] sm:$0xff]  }
 0x551   : > { %v3481_v28 = vadd.f32 %v1376_v25, %v3364_v6 }
 0x552   : > { %1676 = vmatpush1.bf16.msra.mxu0 %v2894_v51 }
 0x553   : > { %1395 = vadd.xlane.f32.xlu1 %v3481_v28  ;;  %1397 = vadd.xlane.f32.xlu0 %v3478_v26 }
 0x554   : > { %1677 = vmatprep.subr.bf16.mxu0 %v2902_v53 }
 0x556   : > { %1678 = vmatpush1.bf16.msra.mxu0 %v2900_v55  ;;  %v2937_v55 = vld [vmem:[%s3341_s30 + $0xf8] sm:$0xff]  }
 0x557   : > { %1399 = vadd.xlane.f32.xlu1 %v3486_v29  ;;  %1679 = vmatprep.subr.bf16.mxu0 %v2908_v57  ;;  %v2939_v57 = vld [vmem:[%s3341_s30 + $0xb8] sm:$0xff]  }
 0x558   : > { %2683 = vmatprep.subr.bf16.mxu1 %v2937_v55 }
 0x55a   : > { %1680 = vmatpush1.bf16.msra.mxu0 %v2906_v59  ;;  %v2942_v59 = vld [vmem:[%s3341_s30 + $0x30] sm:$0xff]  }
 0x55b   : > { %1681 = vmatprep.subr.bf16.mxu0 %v2914_v62  ;;  %v2945_v62 = vld [vmem:[%s3341_s30 + $0xe8] sm:$0xff]  }
 0x55e   : > { %1682 = vmatpush1.bf16.msra.mxu0 %v2912_v61  ;;  %v2944_v61 = vld [vmem:[%s3341_s30 + $0x68] sm:$0xff]  }
 0x55f   : > { %1683 = vmatprep.subr.bf16.mxu0 %v2920_v1  ;;  %v2948_v1 = vld [vmem:[%s3341_s30 + $0x60] sm:$0xff]  }
 0x562   : > { %1684 = vmatpush1.bf16.msra.mxu0 %v2918_v3  ;;  %v2950_v3 = vld [vmem:[%s3341_s30 + $0x20] sm:$0xff]  }
 0x563   : > { %1685 = vmatprep.subr.bf16.mxu0 %v2926_v9  ;;  %v2952_v9 = vld [vmem:[%s3341_s30 + $0x58] sm:$0xff]  }
 0x566   : > { %1686 = vmatpush1.bf16.msra.mxu0 %v2924_v11  ;;  %v2954_v11 = vld [vmem:[%s3341_s30 + $0x18] sm:$0xff]  }
 0x567   : > { %1687 = vmatprep.subr.bf16.mxu0 %v2932_v13  ;;  %v2956_v13 = vld [vmem:[%s3341_s30 + $0x50] sm:$0xff]  }
 0x56a   : > { %1688 = vmatpush1.bf16.msra.mxu0 %v2930_v16  ;;  %v2958_v16 = vld [vmem:[%s3341_s30 + $0x10] sm:$0xff]  }
 0x5d8   : > { %v1394_v5 = vpop.xlane.xlu0 %1393 }
 0x5d9   : > { %v1401_v6 = vmul.f32 0.0078125, %v1394_v5 }
 0x5db   : > { %v3494_v35 = vsub.f32 %v3474_v15, %v1401_v6 }
 0x5dc   : > { %v1396_v36 = vpop.xlane.xlu1 %1395  ;;  %v1398_v37 = vpop.xlane.xlu0 %1397 }
 0x5dd   : > { %v1402_v7 = vmul.f32 0.0078125, %v1396_v36  ;;  %v1403_v38 = vmul.f32 0.0078125, %v1398_v37  ;;  %v1409_v39 = vmul.f32 %v3494_v35, %v3494_v35  ;;  %v2553_v37 = vld [vmem:[%s643_s25] ss:$0 sm:$0xff] }
 0x5df   : > { %v3499_v40 = vsub.f32 %v3481_v28, %v1402_v7  ;;  %v3502_v41 = vsub.f32 %v3478_v26, %v1403_v38  ;;  %1413 = vadd.xlane.f32.xlu0 %v1409_v39 }
 0x5e0   : > { %v1400_v42 = vpop.xlane.xlu1 %1399 }
 0x5e1   : > { %v1404_v44 = vmul.f32 0.0078125, %v1400_v42  ;;  %v1410_v45 = vmul.f32 %v3499_v40, %v3499_v40  ;;  %v1411_v46 = vmul.f32 %v3502_v41, %v3502_v41 }
 0x5e3   : > { %v3509_v47 = vsub.f32 %v3486_v29, %v1404_v44  ;;  %1415 = vadd.xlane.f32.xlu1 %v1410_v45  ;;  %1417 = vadd.xlane.f32.xlu0 %v1411_v46  ;;  %v2554_v44 = vld [vmem:[%s3816_s20] ss:$0 sm:$0xff] }
 0x5e5   : > { %v1412_v48 = vmul.f32 %v3509_v47, %v3509_v47 }
 0x5e7   : > { %1419 = vadd.xlane.f32.xlu1 %v1412_v48 }
 0x668   : > { %v1414_v18 = vpop.xlane.xlu0 %1413 }
 0x669   : > { %v1421_v19 = vmul.f32 0.0078125, %v1414_v18  ;;  %v2960_v18 = vld [vmem:[%s3341_s30 + $0x48] sm:$0xff]  }
 0x66b   : > { %v1425_v20 = vadd.f32 1e-05, %v1421_v19  ;;  %v2961_v19 = vld [vmem:[%s3341_s30 + $0xc8] sm:$0xff]  }
 0x66c   : > { %v1416_v21 = vpop.xlane.xlu1 %1415  ;;  %v1418_v22 = vpop.xlane.xlu0 %1417 }
 0x66d   : > { %2992 = vrsqrt.f32 %v1425_v20  ;;  %v1422_v25 = vmul.f32 0.0078125, %v1416_v21  ;;  %v1423_v27 = vmul.f32 0.0078125, %v1418_v22  ;;  %v2962_v20 = vld [vmem:[%s3341_s30 + $0x8] sm:$0xff]   ;;  %v2964_v22 = vld [vmem:[%s3341_s30 + $0x40] sm:$0xff]  }
 0x66e   : > { %v2963_v21 = vld [vmem:[%s3341_s30 + $0x88] sm:$0xff]  }
 0x66f   : > { %v1426_v4 = vadd.f32 1e-05, %v1422_v25  ;;  %v1427_v30 = vadd.f32 1e-05, %v1423_v27  ;;  %v2965_v25 = vld [vmem:[%s3341_s30 + $0xc0] sm:$0xff]  }
 0x670   : > { %v1420_v33 = vpop.xlane.xlu1 %1419  ;;  %v2966_v27 = vld [vmem:[%s3341_s30] sm:$0xff]  }
 0x671   : > { %2994 = vrsqrt.f32 %v1426_v4  ;;  %v1424_v34 = vmul.f32 0.0078125, %v1420_v33  ;;  %v2967_v4 = vld [vmem:[%s3341_s30 + $0x80] sm:$0xff]   ;;  %v1507_v33 = vsub.s32 3, %v3434_v23 }
 0x672   : > { %2996 = vrsqrt.f32 %v1427_v30  ;;  %v1491_v30 = vld [vmem:[%s3336_s3] sm:$0xf] }
 0x673   : > { %v1428_v5 = vadd.f32 1e-05, %v1424_v34  ;;  %v3593_v34 = vrot.slane %v1491_v30, %v787_v32 }
 0x675   : > { %2998 = vrsqrt.f32 %v1428_v5  ;;  %v3597_v5 = vrot.slane %v1491_v30, %v795_v31 }
 0x67a   : > { %v2993_v6 = vpop.eup %2992 }
 0x67b   : > { %v1433_v36 = vmul.f32 %v2993_v6, %v3494_v35  ;;  %v3601_v6 = vrot.slane %v1491_v30, %v791_v24 }
 0x67d   : > { %v1443_v39 = vmul.f32 %v2553_v37, %v1433_v36  ;;  %v3603_v36 = vrot.slane %v1491_v30, %v1507_v33 }
 0x67e   : > { %v2995_v7 = vpop.eup %2994 }
 0x67f   : > { %v1434_v38 = vmul.f32 %v2995_v7, %v3499_v40  ;;  %v2997_v42 = vpop.eup %2996  ;;  %v1453_v48 = vadd.f32 %v2554_v44, %v1443_v39 }
 0x680   : > { %v1435_v49 = vmul.f32 %v2997_v42, %v3502_v41 }
 0x681   : > { %v1444_v45 = vmul.f32 %v2553_v37, %v1434_v38 }
 0x682   : > { %v2999_v46 = vpop.eup %2998  ;;  %v1445_v52 = vmul.f32 %v2553_v37, %v1435_v49 }
 0x683   : > { %v1454_v35 = vadd.f32 %v2554_v44, %v1444_v45  ;;  %v1436_v50 = vmul.f32 %v2999_v46, %v3509_v47  ;;  %v2936_v47 = vld [vmem:[%s3341_s30 + $0x78] sm:$0xff]  }
 0x684   : > { %v1455_v54 = vadd.f32 %v2554_v44, %v1445_v52  ;;  %2655 = vmatprep.subr.bf16.mxu0 %v2936_v47 }
 0x685   : > { %v1457_v40 = vpack.c.bf16 %v1454_v35, %v1453_v48  ;;  %v1446_v51 = vmul.f32 %v2553_v37, %v1436_v50 }
 0x687   : > { %1706 = vmatmul.mubr.bf16.vlgmr.msra.gmra.mxu0 %v1457_v40  ;;  %1759 = vmatmul.mubr.bf16.vlgmr.msra.gmra.mxu1 %v1457_v40  ;;  %v1456_v53 = vadd.f32 %v2554_v44, %v1446_v51 }
 0x688   : > { %1715 = vmatprep.mubr.bf16.mxu0 %v3143_v43  ;;  %1768 = vmatprep.mubr.bf16.mxu1 %v3143_v43  ;;  %v2940_v43 = vld [vmem:[%s3341_s30 + $0x70] sm:$0xff]   ;;  %s3146_s30 = smov [#allocation6]  }
 0x689   : > { %v1458_v41 = vpack.c.bf16 %v1456_v53, %v1455_v54  ;;  %2656 = vmatpush3.bf16.msra.mxu0 %v2938_v56  ;;  %2684 = vmatpush3.bf16.msra.mxu1 %v2939_v57 }
 0x68a   : > { %2657 = vmatprep.subr.bf16.mxu0 %v2940_v43  ;;  %2685 = vmatprep.subr.bf16.mxu1 %v2941_v58 }
 0x68d   : > { %2658 = vmatpush3.bf16.msra.mxu0 %v2942_v59  ;;  %2686 = vmatpush3.bf16.msra.mxu1 %v2943_v60 }
 0x68e   : > { %2659 = vmatprep.subr.bf16.mxu0 %v2944_v61  ;;  %2687 = vmatprep.subr.bf16.mxu1 %v2945_v62 }
 0x68f   : > { %1716 = vmatmul.mubr.bf16.gmra.mxu0 %v1458_v41  ;;  %1769 = vmatmul.mubr.bf16.gmra.mxu1 %v1458_v41 }
 0x691   : > { %2660 = vmatpush3.bf16.msra.mxu0 %v2946_v63  ;;  %2688 = vmatpush3.bf16.msra.mxu1 %v2947_v0 }
 0x692   : > { %2661 = vmatprep.subr.bf16.mxu0 %v2948_v1  ;;  %2689 = vmatprep.subr.bf16.mxu1 %v2949_v2 }
 0x695   : > { %2662 = vmatpush3.bf16.msra.mxu0 %v2950_v3  ;;  %2690 = vmatpush3.bf16.msra.mxu1 %v2951_v8 }
 0x696   : > { %2663 = vmatprep.subr.bf16.mxu0 %v2952_v9  ;;  %2691 = vmatprep.subr.bf16.mxu1 %v2953_v10 }
 0x699   : > { %2664 = vmatpush3.bf16.msra.mxu0 %v2954_v11  ;;  %2692 = vmatpush3.bf16.msra.mxu1 %v2955_v12 }
 0x69a   : > { %2665 = vmatprep.subr.bf16.mxu0 %v2956_v13  ;;  %2693 = vmatprep.subr.bf16.mxu1 %v2957_v14 }
 0x69d   : > { %2666 = vmatpush3.bf16.msra.mxu0 %v2958_v16  ;;  %2694 = vmatpush3.bf16.msra.mxu1 %v2959_v17 }
 0x69e   : > { %2667 = vmatprep.subr.bf16.mxu0 %v2960_v18  ;;  %2695 = vmatprep.subr.bf16.mxu1 %v2961_v19 }
 0x6a1   : > { %2668 = vmatpush3.bf16.msra.mxu0 %v2962_v20  ;;  %2696 = vmatpush3.bf16.msra.mxu1 %v2963_v21 }
 0x6a2   : > { %2669 = vmatprep.subr.bf16.mxu0 %v2964_v22  ;;  %2697 = vmatprep.subr.bf16.mxu1 %v2965_v25 }
 0x6a5   : > { %2670 = vmatpush3.bf16.msra.mxu0 %v2966_v27  ;;  %2698 = vmatpush3.bf16.msra.mxu1 %v2967_v4 }
 0x747   : > { %v1707_v37 = vpop.f32.mrf.mxu0  ;;  %v1760_v7 = vpop.f32.mrf.mxu1 }
 0x748   : > { %v3606_v38 = vadd.f32 %v1707_v37, %v3593_v34  ;;  %v3609_v39 = vadd.f32 %v1760_v7, %v3597_v5 }
 0x749   : > { %v1709_v32 = vpop.f32.mrf.mxu0  ;;  %v1762_v42 = vpop.f32.mrf.mxu1 }
 0x74a   : > { %v1779_v31 = vmul.f32 %v3606_v38, %v3606_v38  ;;  %v1781_v23 = vmul.f32 %v3609_v39, %v3609_v39  ;;  %v3616_v24 = vadd.f32 %v1709_v32, %v3601_v6  ;;  %v3619_v44 = vadd.f32 %v1762_v42, %v3603_v36 }
 0x74b   : > { %v1711_v45 = vpop.f32.mrf.mxu0  ;;  %v1764_v46 = vpop.f32.mrf.mxu1 }
 0x74c   : > { %v1795_v48 = vmul.f32 %v1779_v31, %v3606_v38  ;;  %v1797_v35 = vmul.f32 %v1781_v23, %v3609_v39  ;;  %v1780_v49 = vmul.f32 %v3616_v24, %v3616_v24  ;;  %v1782_v50 = vmul.f32 %v3619_v44, %v3619_v44 }
 0x74d   : > { %v3628_v40 = vadd.f32 %v1711_v45, %v3593_v34  ;;  %v3631_v51 = vadd.f32 %v1764_v46, %v3597_v5  ;;  %v1713_v52 = vpop.f32.mrf.mxu0  ;;  %v1766_v53 = vpop.f32.mrf.mxu1 }
 0x74e   : > { %v1811_v54 = vmul.f32 0.044715, %v1795_v48  ;;  %v1813_v41 = vmul.f32 0.044715, %v1797_v35  ;;  %v1796_v47 = vmul.f32 %v1780_v49, %v3616_v24  ;;  %v1798_v55 = vmul.f32 %v1782_v50, %v3619_v44 }
 0x74f   : > { %v1783_v56 = vmul.f32 %v3628_v40, %v3628_v40  ;;  %v1785_v57 = vmul.f32 %v3631_v51, %v3631_v51  ;;  %v3640_v43 = vadd.f32 %v1713_v52, %v3601_v6  ;;  %v3643_v58 = vadd.f32 %v1766_v53, %v3603_v36  ;;  %v1717_v59 = vpop.f32.mrf.mxu0  ;;  %v1770_v60 = vpop.f32.mrf.mxu1 }
 0x750   : > { %v1827_v61 = vadd.f32 %v1811_v54, %v3606_v38  ;;  %v1829_v62 = vadd.f32 %v1813_v41, %v3609_v39  ;;  %v1812_v63 = vmul.f32 0.044715, %v1796_v47  ;;  %v1814_v0 = vmul.f32 0.044715, %v1798_v55 }
 0x751   : > { %v1799_v1 = vmul.f32 %v1783_v56, %v3628_v40  ;;  %v1801_v2 = vmul.f32 %v1785_v57, %v3631_v51  ;;  %v1784_v3 = vmul.f32 %v3640_v43, %v3640_v43  ;;  %v1786_v8 = vmul.f32 %v3643_v58, %v3643_v58  ;;  %v1719_v13 = vpop.f32.mrf.mxu0  ;;  %v1772_v19 = vpop.f32.mrf.mxu1 }
 0x752   : > { %v1843_v9 = vmul.f32 0.7978846, %v1827_v61  ;;  %v1845_v10 = vmul.f32 0.7978846, %v1829_v62  ;;  %v1828_v11 = vadd.f32 %v1812_v63, %v3616_v24  ;;  %v1830_v12 = vadd.f32 %v1814_v0, %v3619_v44 }
 0x753   : > { %v1815_v14 = vmul.f32 0.044715, %v1799_v1  ;;  %v1817_v16 = vmul.f32 0.044715, %v1801_v2  ;;  %v1800_v17 = vmul.f32 %v1784_v3, %v3640_v43  ;;  %v1802_v18 = vmul.f32 %v1786_v8, %v3643_v58  ;;  %v1721_v7 = vpop.f32.mrf.mxu0  ;;  %v1774_v23 = vpop.f32.mrf.mxu1 }
 0x754   : > { %3000 = vtanh.f32 %v1843_v9  ;;  %v1844_v20 = vmul.f32 0.7978846, %v1828_v11  ;;  %v1846_v21 = vmul.f32 0.7978846, %v1830_v12  ;;  %v3658_v22 = vadd.f32 %v1717_v59, %v3593_v34 }
 0x755   : > { %3002 = vtanh.f32 %v1845_v10  ;;  %v1831_v25 = vadd.f32 %v1815_v14, %v3628_v40  ;;  %v1833_v27 = vadd.f32 %v1817_v16, %v3631_v51  ;;  %v1816_v4 = vmul.f32 0.044715, %v1800_v17  ;;  %v1723_v47 = vpop.f32.mrf.mxu0  ;;  %v1776_v59 = vpop.f32.mrf.mxu1 }
 0x756   : > { %3004 = vtanh.f32 %v1844_v20  ;;  %v1818_v30 = vmul.f32 0.044715, %v1802_v18  ;;  %v1787_v33 = vmul.f32 %v3658_v22, %v3658_v22  ;;  %v3665_v37 = vadd.f32 %v1770_v60, %v3597_v5 }
 0x757   : > { %3006 = vtanh.f32 %v1846_v21  ;;  %v1847_v32 = vmul.f32 0.7978846, %v1831_v25  ;;  %v1849_v42 = vmul.f32 0.7978846, %v1833_v27  ;;  %v1832_v31 = vadd.f32 %v1816_v4, %v3640_v43 }
 0x758   : > { %v1834_v45 = vadd.f32 %v1818_v30, %v3643_v58  ;;  %v1803_v46 = vmul.f32 %v1787_v33, %v3658_v22  ;;  %v1789_v48 = vmul.f32 %v3665_v37, %v3665_v37  ;;  %v3673_v35 = vadd.f32 %v1719_v13, %v3601_v6 }
 0x759   : > { %3008 = vtanh.f32 %v1847_v32  ;;  %v1848_v49 = vmul.f32 0.7978846, %v1832_v31  ;;  %v3676_v50 = vadd.f32 %v1772_v19, %v3603_v36  ;;  %v3679_v52 = vadd.f32 %v1721_v7, %v3593_v34 }
 0x75a   : > { %3010 = vtanh.f32 %v1849_v42  ;;  %v1850_v53 = vmul.f32 0.7978846, %v1834_v45  ;;  %v1819_v54 = vmul.f32 0.044715, %v1803_v46  ;;  %v1805_v41 = vmul.f32 %v1789_v48, %v3665_v37 }
 0x75b   : > { %3012 = vtanh.f32 %v1848_v49  ;;  %v1788_v55 = vmul.f32 %v3673_v35, %v3673_v35  ;;  %v1790_v56 = vmul.f32 %v3676_v50, %v3676_v50  ;;  %v1791_v57 = vmul.f32 %v3679_v52, %v3679_v52 }
 0x75c   : > { %3014 = vtanh.f32 %v1850_v53  ;;  %v1835_v34 = vadd.f32 %v1819_v54, %v3658_v22  ;;  %v1821_v60 = vmul.f32 0.044715, %v1805_v41  ;;  %v3690_v61 = vadd.f32 %v1774_v23, %v3597_v5 }
 0x75d   : > { %v1804_v62 = vmul.f32 %v1788_v55, %v3673_v35  ;;  %v1806_v63 = vmul.f32 %v1790_v56, %v3676_v50  ;;  %v1807_v0 = vmul.f32 %v1791_v57, %v3679_v52  ;;  %v3696_v1 = vadd.f32 %v1723_v47, %v3601_v6 }
 0x75e   : > { %v1851_v2 = vmul.f32 0.7978846, %v1835_v34  ;;  %v1837_v3 = vadd.f32 %v1821_v60, %v3665_v37  ;;  %v1793_v8 = vmul.f32 %v3690_v61, %v3690_v61  ;;  %v3702_v9 = vadd.f32 %v1776_v59, %v3603_v36 }
 0x75f   : > { %v1820_v5 = vmul.f32 0.044715, %v1804_v62  ;;  %v1822_v10 = vmul.f32 0.044715, %v1806_v63  ;;  %v1823_v11 = vmul.f32 0.044715, %v1807_v0  ;;  %v1792_v12 = vmul.f32 %v3696_v1, %v3696_v1 }
 0x760   : > { %v1853_v13 = vmul.f32 0.7978846, %v1837_v3  ;;  %v1809_v14 = vmul.f32 %v1793_v8, %v3690_v61  ;;  %v1794_v6 = vmul.f32 %v3702_v9, %v3702_v9  ;;  %3016 = vtanh.f32 %v1851_v2 }
 0x761   : > { %v3001_v16 = vpop.eup %3000  ;;  %v1836_v17 = vadd.f32 %v1820_v5, %v3673_v35  ;;  %v1838_v18 = vadd.f32 %v1822_v10, %v3676_v50  ;;  %v1839_v36 = vadd.f32 %v1823_v11, %v3679_v52  ;;  %v1808_v19 = vmul.f32 %v1792_v12, %v3696_v1 }
 0x762   : > { %v3003_v20 = vpop.eup %3002  ;;  %v1825_v21 = vmul.f32 0.044715, %v1809_v14  ;;  %v1810_v25 = vmul.f32 %v1794_v6, %v3702_v9  ;;  %3018 = vtanh.f32 %v1853_v13  ;;  %v1875_v46 = vadd.f32 1.0, %v3001_v16 }
 0x763   : > { %v3005_v27 = vpop.eup %3004  ;;  %v1852_v4 = vmul.f32 0.7978846, %v1836_v17  ;;  %v1854_v30 = vmul.f32 0.7978846, %v1838_v18  ;;  %v1855_v7 = vmul.f32 0.7978846, %v1839_v36 }
 0x764   : > { %v3007_v33 = vpop.eup %3006  ;;  %v1841_v32 = vadd.f32 %v1825_v21, %v3690_v61  ;;  %v1824_v42 = vmul.f32 0.044715, %v1808_v19  ;;  %v1826_v31 = vmul.f32 0.044715, %v1810_v25  ;;  %v1876_v23 = vadd.f32 1.0, %v3005_v27 }
 0x765   : > { %3020 = vtanh.f32 %v1852_v4  ;;  %v1877_v54 = vadd.f32 1.0, %v3003_v20  ;;  %v1878_v0 = vadd.f32 1.0, %v3007_v33  ;;  %v1891_v2 = vmul.f32 0.5, %v1875_v46 }
 0x766   : > { %v3009_v45 = vpop.eup %3008  ;;  %3022 = vtanh.f32 %v1854_v30  ;;  %v1857_v48 = vmul.f32 0.7978846, %v1841_v32  ;;  %v1840_v49 = vadd.f32 %v1824_v42, %v3696_v1  ;;  %v1842_v47 = vadd.f32 %v1826_v31, %v3702_v9 }
 0x767   : > { %v3011_v53 = vpop.eup %3010  ;;  %v1879_v41 = vadd.f32 1.0, %v3009_v45  ;;  %3024 = vtanh.f32 %v1855_v7  ;;  %v1892_v59 = vmul.f32 0.5, %v1876_v23  ;;  %v1893_v5 = vmul.f32 0.5, %v1877_v54 }
 0x768   : > { %v3013_v55 = vpop.eup %3012  ;;  %v1881_v56 = vadd.f32 1.0, %v3011_v53  ;;  %3026 = vtanh.f32 %v1857_v48  ;;  %v1856_v57 = vmul.f32 0.7978846, %v1840_v49  ;;  %v1858_v62 = vmul.f32 0.7978846, %v1842_v47 }
 0x769   : > { %v3015_v34 = vpop.eup %3014  ;;  %v1895_v60 = vmul.f32 0.5, %v1879_v41  ;;  %v1880_v63 = vadd.f32 1.0, %v3013_v55  ;;  %v1894_v11 = vmul.f32 0.5, %v1878_v0  ;;  %v1908_v6 = vmul.f32 %v1892_v59, %v3616_v24 }
 0x76a   : > { %v1897_v3 = vmul.f32 0.5, %v1881_v56  ;;  %3028 = vtanh.f32 %v1856_v57  ;;  %v1882_v8 = vadd.f32 1.0, %v3015_v34  ;;  %v1907_v17 = vmul.f32 %v1891_v2, %v3606_v38 }
 0x76b   : > { %3030 = vtanh.f32 %v1858_v62  ;;  %v1896_v10 = vmul.f32 0.5, %v1880_v63  ;;  %v1911_v12 = vmul.f32 %v1895_v60, %v3628_v40  ;;  %v1910_v18 = vmul.f32 %v1894_v11, %v3619_v44 }
 0x76c   : > { %v1898_v13 = vmul.f32 0.5, %v1882_v8  ;;  %v1913_v14 = vmul.f32 %v1897_v3, %v3631_v51  ;;  %v1909_v19 = vmul.f32 %v1893_v5, %v3609_v39 }
 0x76d   : > { %v1912_v16 = vmul.f32 %v1896_v10, %v3640_v43  ;;  %v3017_v21 = vpop.eup %3016  ;;  %v1923_v25 = vpack.c.bf16 %v1911_v12, %v1907_v17 }
 0x76e   : > { %v1914_v36 = vmul.f32 %v1898_v13, %v3643_v58  ;;  %v1925_v4 = vpack.c.bf16 %v1913_v14, %v1909_v19  ;;  %v1883_v33 = vadd.f32 1.0, %v3017_v21 }
 0x76f   : > { %v1924_v20 = vpack.c.bf16 %v1912_v16, %v1908_v6  ;;  %v3019_v40 = vpop.eup %3018 }
 0x770   : > { %v1926_v27 = vpack.c.bf16 %v1914_v36, %v1910_v18  ;;  %v1885_v7 = vadd.f32 1.0, %v3019_v40  ;;  %v1899_v53 = vmul.f32 0.5, %v1883_v33 }
 0x771   : > { %2226 = vmatprep.mubr.bf16.mxu0 %v1924_v20 }
 0x772   : > { %v3021_v51 = vpop.eup %3020  ;;  %2275 = vmatprep.mubr.bf16.mxu1 %v1926_v27  ;;  %2227 = vmatmul.mubr.bf16.vlgmr.msra.gmra.mxu0 %v1923_v25  ;;  %v1901_v41 = vmul.f32 0.5, %v1885_v7  ;;  %v1915_v62 = vmul.f32 %v1899_v53, %v3658_v22 }
 0x773   : > { %v3023_v24 = vpop.eup %3022  ;;  %2276 = vmatmul.mubr.bf16.vlgmr.msra.gmra.mxu1 %v1925_v4  ;;  %v1884_v38 = vadd.f32 1.0, %v3021_v51 }
 0x774   : > { %v3025_v43 = vpop.eup %3024  ;;  %v1886_v44 = vadd.f32 1.0, %v3023_v24  ;;  %v1917_v0 = vmul.f32 %v1901_v41, %v3665_v37 }
 0x775   : > { %v3027_v30 = vpop.eup %3026  ;;  %v1887_v58 = vadd.f32 1.0, %v3025_v43  ;;  %v1900_v45 = vmul.f32 0.5, %v1884_v38 }
 0x776   : > { %v1889_v39 = vadd.f32 1.0, %v3027_v30  ;;  %v1902_v49 = vmul.f32 0.5, %v1886_v44 }
 0x777   : > { %v3029_v32 = vpop.eup %3028  ;;  %v1903_v42 = vmul.f32 0.5, %v1887_v58  ;;  %v1916_v56 = vmul.f32 %v1900_v45, %v3673_v35 }
 0x778   : > { %v3031_v31 = vpop.eup %3030  ;;  %v1888_v23 = vadd.f32 1.0, %v3029_v32  ;;  %v1905_v46 = vmul.f32 0.5, %v1889_v39  ;;  %v1918_v34 = vmul.f32 %v1902_v49, %v3676_v50  ;;  %v2587_v50 = vld [vmem:[%s663_s17] ss:$0 sm:$0xff]  ;;  %s2309_s17 = sshll.u32 %s3146_s30, 4  ;;  %s2310_s17 = int_to_ptr.vmem [resolvable:$true] %s2309_s17 }
 0x779   : > { %v1890_v48 = vadd.f32 1.0, %v3031_v31  ;;  %v1919_v55 = vmul.f32 %v1903_v42, %v3679_v52  ;;  %s3060_s28 = scalar_lea.vmem %s2310_s17, 512  ;;  %p3067_p13 = scmp.lt.s32.totalorder %s2310_s17, %s2310_s17 }
 0x77a   : > { %v1904_v54 = vmul.f32 0.5, %v1888_v23  ;;  %v1921_v59 = vmul.f32 %v1905_v46, %v3690_v61  ;;  %p3061_p10 = scmp.ne.s32.totalorder %s2310_s17, %s3060_s28  ;;  %p3068_p0 = scmp.lt.s32.totalorder %s3060_s28, %s3060_s28 }
 0x77b   : > { %v1906_v47 = vmul.f32 0.5, %v1890_v48  ;;  %v1927_v3 = vpack.c.bf16 %v1919_v55, %v1915_v62 }
 0x77c   : > { %v1920_v57 = vmul.f32 %v1904_v54, %v3696_v1  ;;  %v1929_v52 = vpack.c.bf16 %v1921_v59, %v1917_v0  ;;  %p3062_p11 = pnand %p3061_p10, %p3743_p9  ;;  %p3069_p1 = por %p3068_p0, %p3067_p13 }
 0x77d   : > { %v1922_v60 = vmul.f32 %v1906_v47, %v3702_v9 }
 0x77e   : > { %v1928_v63 = vpack.c.bf16 %v1920_v57, %v1916_v56  ;;  %p3063_p12 = pneg %p3062_p11 }
 0x77f   : > { %v1930_v2 = vpack.c.bf16 %v1922_v60, %v1918_v34 }
 0x780   : > { %2234 = vmatprep.mubr.bf16.mxu0 %v1928_v63  ;;  %p3070_p2 = pnand %p3069_p1, %p3063_p12 }
 0x781   : > { %2283 = vmatprep.mubr.bf16.mxu1 %v1930_v2  ;;  %2235 = vmatmul.mubr.bf16.gmra.mxu0 %v1927_v3 }
 0x782   : > { %2284 = vmatmul.mubr.bf16.gmra.mxu1 %v1929_v52 }
 0x832   : > { %v2671_v35 = vpop.f32.mrf.mxu0 }
 0x833   : > { %v2699_v1 = vpop.f32.mrf.mxu1 }
 0x834   : > { %v2672_v61 = vpop.f32.mrf.mxu0 }
 0x835   : > { %v2673_v9 = vadd.f32 %v2672_v61, %v2671_v35  ;;  %v2700_v22 = vpop.f32.mrf.mxu1 }
 0x836   : > { %v2674_v8 = vpop.f32.mrf.mxu0  ;;  %v2701_v37 = vadd.f32 %v2700_v22, %v2699_v1 }
 0x837   : > { %v2229_v5 = vadd.f32 %v2673_v9, %v2587_v50  ;;  %v2702_v10 = vpop.f32.mrf.mxu1 }
 0x838   : > { %v2675_v11 = vpop.f32.mrf.mxu0 }
 0x839   : > { %v2278_v12 = vadd.f32 %v2701_v37, %v2229_v5  ;;  %v2676_v13 = vadd.f32 %v2675_v11, %v2674_v8  ;;  %v2703_v14 = vpop.f32.mrf.mxu1 }
 0x83a   : > { %v2704_v17 = vadd.f32 %v2703_v14, %v2702_v10 }
 0x83b   : > { %v2292_v6 = vadd.f32 %v2278_v12, %v3474_v15  ;;  %v2232_v16 = vadd.f32 %v2676_v13, %v2587_v50 }
 0x83d   : > { %2296 = vst [vmem:[#allocation6] sm:$0xff] %v2292_v6  ;;  %v2281_v18 = vadd.f32 %v2704_v17, %v2232_v16 }
 0x83f   : > { %v2293_v36 = vadd.f32 %v2281_v18, %v3481_v28 }
 0x841   : > { %2297 = vst [vmem:[#allocation6 + $0x8] sm:$0xff] %v2293_v36  ;;  %v2677_v19 = vpop.f32.mrf.mxu0 }
 0x842   : > { %v2705_v20 = vpop.f32.mrf.mxu1 }
 0x843   : > { %v2678_v21 = vpop.f32.mrf.mxu0 }
 0x844   : > { %v2679_v25 = vadd.f32 %v2678_v21, %v2677_v19  ;;  %v2706_v27 = vpop.f32.mrf.mxu1 }
 0x845   : > { %v2680_v40 = vpop.f32.mrf.mxu0  ;;  %v2707_v51 = vadd.f32 %v2706_v27, %v2705_v20 }
 0x846   : > { %v2237_v4 = vadd.f32 %v2679_v25, %v2587_v50  ;;  %v2708_v24 = vpop.f32.mrf.mxu1 }
 0x847   : > { %v2681_v43 = vpop.f32.mrf.mxu0 }
 0x848   : > { %v2286_v38 = vadd.f32 %v2707_v51, %v2237_v4  ;;  %v2682_v15 = vadd.f32 %v2681_v43, %v2680_v40  ;;  %v2709_v30 = vpop.f32.mrf.mxu1 }
 0x849   : > { %v2710_v58 = vadd.f32 %v2709_v30, %v2708_v24 }
 0x84a   : > { %v2294_v44 = vadd.f32 %v2286_v38, %v3478_v26  ;;  %v2240_v33 = vadd.f32 %v2682_v15, %v2587_v50 }
 0x84c   : > { %2298 = vst [vmem:[#allocation6 + $0x10] sm:$0xff] %v2294_v44  ;;  %v2289_v28 = vadd.f32 %v2710_v58, %v2240_v33 }
 0x84e   : > { %v2295_v7 = vadd.f32 %v2289_v28, %v3486_v29 }
 0x850   : > { %2299 = vst [vmem:[#allocation6 + $0x18] sm:$0xff] %v2295_v7 }
 0x851   : > { %3073 = shalt.err (!%p3070_p2)
}
 0x852   : > { %s3147_s24 = smov 128   ;;  %s3148_s23 = smov 8  }
 0x853   : > { %s3820_s21 = sld [smem:[#allocation18_spill]] }
 0x859   : > { %2782 = dma.vmem_to_hbm [thread:$0]  (%p3743_p9), %s2310_s17, 512, %s3820_s21, [#allocation5], %s3147_s24, %s3147_s24, %s3148_s23  }
 0x85a   : > { %3113 = dma.done.wait (%p3743_p9), [#allocation5], 512  }
 0x85b   : > { %3115 = vsyncadd (%p3743_p9), [#allocation5], 4294966784 }
 0x85c PF: > { %s3821_s26 = sld [smem:[#allocation12_spill]] }
 0x85d   : > { %s3822_s25 = sld [smem:[#allocation9_spill]] }
 0x85e   : > { %s3824_s27 = sld [smem:[#allocation14_spill]] }
 0x85f   : > { %s3825_s28 = sld [smem:[#allocation11_spill]] }
 0x860   : > { %s3826_s29 = sld [smem:[#allocation13_spill]] }
 0x862   : > { %s27_s30 = sadd.s32 1, %s3821_s26   ;;  %s3823_s26 = sld [smem:[#allocation10_spill]] }
 0x863   : > { %p24_p3 = scmp.ge.s32.totalorder %s27_s30, 4  }
 0x865   :  { %26 = sbr.rel (!%p24_p3) target bundleno = 10 (0xa), region = 150 }
 0x86a   :  { %2325 = vsyncpa [#allocation4], 1 }
 0x86b   :  { %2327 = vsyncpa [#allocation4 + $0x1], 1 }
 0x86c   :  { %2328 = vsyncpa [#allocation5], 1 }
 0x86d   :  { %2330 = vsyncpa [#allocation5 + $0x1], 1 }

</bundles_post_ra>
